<compile_context>
chip_gen: v6e
topology: v6e:2x2x1
jax: 0.10.0
libtpu: 0.0.40
codegen_flags: <defaults>
</compile_context>

<pallas_src>
import functools

import jax
import jax.numpy as jnp
from jax.experimental import pallas as pl
from jax.experimental.pallas import tpu as pltpu


# -----------------------------------------------------------------------------
# Fused kernel: 5 x (Conv1d SAME + bias + ReLU + LayerNorm) + final Linear
# -----------------------------------------------------------------------------
def fused_pitch_kernel(x_ref, w_ref, b_ref, g_ref, beta_ref, lw_ref, lb_ref,
                       o_ref, xpad_ref,
                       *, n_layers, K, pad, n_chans, lpad):
    # x_ref    : (1, T, idim)            input for one batch element (unpadded)
    # w_ref    : (L, K, C, C)   bf16     conv weights, tap-major, zero padded
    # b_ref    : (L, 1, C)      f32      conv biases        (padded lanes = 0)
    # g_ref    : (L, 1, C)      f32      layernorm gamma    (padded lanes = 0)
    # beta_ref : (L, 1, C)      f32      layernorm beta     (padded lanes = 0)
    # lw_ref   : (C, odim)      bf16     final linear weight (zero-padded rows)
    # lb_ref   : (1, odim)      f32      final linear bias
    # o_ref    : (1, T, odim)            output
    # xpad_ref : (lpad + T + lpad, C) bf16  scratch slab providing the SAME halo
    T = x_ref.shape[1]
    idim = x_ref.shape[2]
    C = xpad_ref.shape[-1]

    # Zero ONLY the halo rows, every grid step (do NOT gate on program_id:
    # under v7x megacore each TensorCore has its own scratch).
    zero_halo = jnp.zeros((lpad, C), xpad_ref.dtype)
    xpad_ref[pl.ds(0, lpad), :] = zero_halo
    xpad_ref[pl.ds(lpad + T, lpad), :] = zero_halo

    # Body rows: write the narrow input, zero-extended to C lanes in-register
    # (no HBM-side channel padding).
    x = x_ref[0].astype(jnp.float32)                       # (T, idim)
    if idim < C:
        x = jnp.concatenate([x, jnp.zeros((T, C - idim), jnp.float32)], axis=-1)
    xpad_ref[pl.ds(lpad, T), :] = x.astype(xpad_ref.dtype)

    inv_n = jnp.float32(1.0 / n_chans)

    for l in range(n_layers):  # n_layers is static -> fully unrolled
        # Conv1d(SAME) as K accumulated MXU matmuls, bf16 operands, f32 acc.
        acc = jnp.dot(xpad_ref[pl.ds(lpad - pad, T), :], w_ref[l, 0],
                      preferred_element_type=jnp.float32)
        for k in range(1, K):
            acc += jnp.dot(xpad_ref[pl.ds(lpad - pad + k, T), :], w_ref[l, k],
                           preferred_element_type=jnp.float32)

        # bias + ReLU (padded lanes stay exactly zero: zero weight cols / bias).
        acc = jnp.maximum(acc + b_ref[l], 0.0)

        # LayerNorm over the real n_chans channels. No mask needed: padded
        # lanes of acc are exactly zero, so full-lane sums are already correct.
        mean = jnp.sum(acc, axis=-1, keepdims=True) * inv_n
        var = jnp.sum(acc * acc, axis=-1, keepdims=True) * inv_n - mean * mean
        h = (acc - mean) * jax.lax.rsqrt(var + 1e-5) * g_ref[l] + beta_ref[l]
        # padded lanes: (0 - mean) * rsqrt * 0 + 0 = 0 -> invariant preserved.

        # Dropout: identity in eval mode.
        xpad_ref[pl.ds(lpad, T), :] = h.astype(xpad_ref.dtype)  # aligned store

    # Final Linear over channels, written directly at odim width.
    y = jnp.dot(xpad_ref[pl.ds(lpad, T), :], lw_ref[...],
                preferred_element_type=jnp.float32) + lb_ref[...]
    o_ref[0] = y.astype(o_ref.dtype)


def _round_up(x, m):
    return ((x + m - 1) // m) * m


# -----------------------------------------------------------------------------
# Wrapper: pack params into lane-dense bf16/f32 layouts and run ONE pallas_call
# -----------------------------------------------------------------------------
@functools.partial(jax.jit, static_argnames=("kernel_size",))
def pitch_predictor_forward(params, xs, kernel_size=5):
    """xs: [B, T, idim] -> [B, T, odim]."""
    B, T, idim = xs.shape
    n_layers = len(params["convs"])
    n_chans = params["convs"][0][0].shape[-1]
    odim = params["lin_w"].shape[-1]
    pad = (kernel_size - 1) // 2
    lpad = _round_up(max(pad, 1), 8)          # sublane-aligned halo
    C = _round_up(max(n_chans, idim), 128)    # internal lane-dense channel width

    f32, bf16 = jnp.float32, jnp.bfloat16

    # Pack + zero-pad parameters (tiny tensors; done once per traced call).
    w_stack, b_stack, g_stack, beta_stack = [], [], [], []
    for (w, b, g, beta) in params["convs"]:
        _, cin, cout = w.shape
        wp = jnp.zeros((kernel_size, C, C), f32).at[:, :cin, :cout].set(w)
        w_stack.append(wp)                                    # (K, C, C)
        b_stack.append(jnp.zeros((1, C), f32).at[:, :cout].set(b))
        g_stack.append(jnp.zeros((1, C), f32).at[:, :cout].set(g))
        beta_stack.append(jnp.zeros((1, C), f32).at[:, :cout].set(beta))
    w_stack = jnp.stack(w_stack).astype(bf16)   # (L, K, C, C)  bf16 MXU operands
    b_stack = jnp.stack(b_stack)                # (L, 1, C)     f32
    g_stack = jnp.stack(g_stack)                # (L, 1, C)     f32
    beta_stack = jnp.stack(beta_stack)          # (L, 1, C)     f32

    lin_w = jnp.zeros((C, odim), f32).at[:n_chans, :].set(params["lin_w"]).astype(bf16)
    lin_b = params["lin_b"].astype(f32).reshape(1, odim)

    kernel = functools.partial(
        fused_pitch_kernel,
        n_layers=n_layers, K=kernel_size, pad=pad, n_chans=n_chans, lpad=lpad)

    out = pl.pallas_call(
        kernel,
        out_shape=jax.ShapeDtypeStruct((B, T, odim), xs.dtype),
        grid=(B,),
        in_specs=[
            pl.BlockSpec((1, T, idim), lambda i: (i, 0, 0)),
            pl.BlockSpec((n_layers, kernel_size, C, C), lambda i: (0, 0, 0, 0)),
            pl.BlockSpec((n_layers, 1, C), lambda i: (0, 0, 0)),
            pl.BlockSpec((n_layers, 1, C), lambda i: (0, 0, 0)),
            pl.BlockSpec((n_layers, 1, C), lambda i: (0, 0, 0)),
            pl.BlockSpec((C, odim), lambda i: (0, 0)),
            pl.BlockSpec((1, odim), lambda i: (0, 0)),
        ],
        out_specs=pl.BlockSpec((1, T, odim), lambda i: (i, 0, 0)),
        scratch_shapes=[pltpu.VMEM((lpad + T + lpad, C), jnp.bfloat16)],
        compiler_params=pltpu.CompilerParams(
            dimension_semantics=("parallel",)),   # one batch element per TC on v7x
    )(xs, w_stack, b_stack, g_stack, beta_stack, lin_w, lin_b)

    return out


# -----------------------------------------------------------------------------
# Parameter init (synthetic weights, PyTorch layouts translated)
# -----------------------------------------------------------------------------
def init_pitch_predictor_params(key, idim, n_layers, n_chans, odim, kernel_size):
    params = {"convs": []}
    for idx in range(n_layers):
        in_chans = idim if idx == 0 else n_chans
        key, k1, k2 = jax.random.split(key, 3)
        # Conv weight stored tap-major (K, Cin, Cout); PyTorch Conv1d layout is
        # (Cout, Cin, K) -> a real checkpoint loader must transpose (2, 1, 0).
        w = jax.random.normal(k1, (kernel_size, in_chans, n_chans), jnp.float32) * 0.05
        b = jax.random.normal(k2, (1, n_chans), jnp.float32) * 0.01
        gamma = jnp.ones((1, n_chans), jnp.float32)
        beta = jnp.zeros((1, n_chans), jnp.float32)
        params["convs"].append((w, b, gamma, beta))
    key, k1, k2 = jax.random.split(key, 3)
    params["lin_w"] = jax.random.normal(k1, (n_chans, odim), jnp.float32) * 0.05
    params["lin_b"] = jax.random.normal(k2, (1, odim), jnp.float32) * 0.01
    # TODO(synk): embed_positions / pos_embed_alpha are unused in forward(); not materialized.
    return params


# -----------------------------------------------------------------------------
# Pure-JAX f32 reference (sanity check of the fused Pallas kernel)
# -----------------------------------------------------------------------------
def reference_forward(params, xs, kernel_size=5):
    h = xs
    pad = (kernel_size - 1) // 2
    for (w, b, gamma, beta) in params["convs"]:
        hp = jnp.pad(h, ((0, 0), (pad, pad), (0, 0)))
        T = h.shape[1]
        acc = sum(jnp.einsum("btc,cd->btd", hp[:, k:k + T, :], w[k])
                  for k in range(kernel_size))
        acc = jnp.maximum(acc + b[0][None, None, :], 0.0)
        mean = jnp.mean(acc, axis=-1, keepdims=True)
        var = jnp.mean((acc - mean) ** 2, axis=-1, keepdims=True)
        h = (acc - mean) * jax.lax.rsqrt(var + 1e-5) * gamma[0] + beta[0]
    return jnp.einsum("btc,cd->btd", h, params["lin_w"]) + params["lin_b"][0]


if __name__ == "__main__":
    B, T = 2, 16
    idim, n_layers, n_chans, odim, kernel_size = 8, 5, 32, 2, 5

    key = jax.random.PRNGKey(0)
    key, pkey, xkey = jax.random.split(key, 3)
    params = init_pitch_predictor_params(pkey, idim, n_layers, n_chans, odim, kernel_size)
    xs = jax.random.normal(xkey, (B, T, idim), jnp.float32)

    out = pitch_predictor_forward(params, xs, kernel_size=kernel_size)
    out = jax.block_until_ready(out)
    assert out.shape == (B, T, odim), out.shape

    ref = reference_forward(params, xs, kernel_size=kernel_size)
    # bf16 MXU operands (f32 accumulation) -> relaxed tolerance vs the f32 reference.
    max_err = float(jnp.max(jnp.abs(out - ref)))
    assert jnp.allclose(out, ref, atol=3e-2, rtol=3e-2), max_err

    print("KERNEL_OK")
</pallas_src>

<mosaic_0001>
module attributes {stable_mosaic.version = 11 : i64} {
  func.func @fused_pitch_kernel(%arg0: i32, %arg1: memref<1x16x8xf32, #tpu.memory_space<vmem>>, %arg2: memref<5x5x128x128xbf16, #tpu.memory_space<vmem>>, %arg3: memref<5x1x128xf32, #tpu.memory_space<vmem>>, %arg4: memref<5x1x128xf32, #tpu.memory_space<vmem>>, %arg5: memref<5x1x128xf32, #tpu.memory_space<vmem>>, %arg6: memref<128x2xbf16, #tpu.memory_space<vmem>>, %arg7: memref<1x2xf32, #tpu.memory_space<vmem>>, %arg8: memref<1x16x2xf32, #tpu.memory_space<vmem>>, %arg9: memref<32x128xbf16, #tpu.memory_space<vmem>>) attributes {dimension_semantics = [#tpu.dimension_semantics<parallel>], iteration_bounds = array<i64: 2>, scalar_prefetch = 0 : i64, scratch_operands = 1 : i64, tpu.core_type = #tpu.core_type<tc>, window_params = [{transform_indices = @transform_0, window_bounds = array<i64: 1, 16, 8>}, {pipeline_mode = #tpu.pipeline_mode<synchronous>, transform_indices = @transform_1, window_bounds = array<i64: 5, 5, 128, 128>}, {pipeline_mode = #tpu.pipeline_mode<synchronous>, transform_indices = @transform_2, window_bounds = array<i64: 5, 1, 128>}, {pipeline_mode = #tpu.pipeline_mode<synchronous>, transform_indices = @transform_3, window_bounds = array<i64: 5, 1, 128>}, {pipeline_mode = #tpu.pipeline_mode<synchronous>, transform_indices = @transform_4, window_bounds = array<i64: 5, 1, 128>}, {pipeline_mode = #tpu.pipeline_mode<synchronous>, transform_indices = @transform_5, window_bounds = array<i64: 128, 2>}, {pipeline_mode = #tpu.pipeline_mode<synchronous>, transform_indices = @transform_6, window_bounds = array<i64: 1, 2>}, {transform_indices = @transform_7, window_bounds = array<i64: 1, 16, 2>}]} {
    %cst = arith.constant 0.000000e+00 : bf16
    %0 = vector.broadcast %cst : bf16 to vector<8x128xbf16>
    %c0 = arith.constant 0 : index
    %c0_0 = arith.constant 0 : index
    %1 = vector.load %arg9[%c0, %c0_0] : memref<32x128xbf16, #tpu.memory_space<vmem>>, vector<8x128xbf16>
    tpu.vector_store %arg9[%c0, %c0_0], %0 {strides = array<i32>} : memref<32x128xbf16, #tpu.memory_space<vmem>>, vector<8x128xbf16>,
    %c24 = arith.constant 24 : index
    %c0_1 = arith.constant 0 : index
    %2 = vector.load %arg9[%c24, %c0_1] : memref<32x128xbf16, #tpu.memory_space<vmem>>, vector<8x128xbf16>
    tpu.vector_store %arg9[%c24, %c0_1], %0 {strides = array<i32>} : memref<32x128xbf16, #tpu.memory_space<vmem>>, vector<8x128xbf16>,
    %c0_2 = arith.constant 0 : index
    %c0_3 = arith.constant 0 : index
    %c0_4 = arith.constant 0 : index
    %3 = vector.load %arg1[%c0_2, %c0_3, %c0_4] : memref<1x16x8xf32, #tpu.memory_space<vmem>>, vector<1x16x8xf32>
    %4 = vector.shape_cast %3 : vector<1x16x8xf32> to vector<16x8xf32>
    %cst_5 = arith.constant 0.000000e+00 : f32
    %5 = vector.broadcast %cst_5 : f32 to vector<16x120xf32>
    %6 = tpu.concatenate %4, %5 in 1 : vector<16x8xf32>, vector<16x120xf32> -> vector<16x128xf32>
    %7 = arith.truncf %6 : vector<16x128xf32> to vector<16x128xbf16>
    %c8 = arith.constant 8 : index
    %c0_6 = arith.constant 0 : index
    %8 = vector.load %arg9[%c8, %c0_6] : memref<32x128xbf16, #tpu.memory_space<vmem>>, vector<16x128xbf16>
    tpu.vector_store %arg9[%c8, %c0_6], %7 {strides = array<i32>} : memref<32x128xbf16, #tpu.memory_space<vmem>>, vector<16x128xbf16>,
    %c6 = arith.constant 6 : index
    %c0_7 = arith.constant 0 : index
    %9 = vector.load %arg9[%c6, %c0_7] : memref<32x128xbf16, #tpu.memory_space<vmem>>, vector<16x128xbf16>
    %c0_8 = arith.constant 0 : index
    %c0_9 = arith.constant 0 : index
    %c0_10 = arith.constant 0 : index
    %c0_11 = arith.constant 0 : index
    %10 = vector.load %arg2[%c0_8, %c0_9, %c0_10, %c0_11] : memref<5x5x128x128xbf16, #tpu.memory_space<vmem>>, vector<1x1x128x128xbf16>
    %11 = vector.shape_cast %10 : vector<1x1x128x128xbf16> to vector<128x128xbf16>
    %cst_12 = arith.constant dense<0.000000e+00> : vector<16x128xf32>
    %12 = tpu.matmul %9, %11, %cst_12 {dimension_numbers = #tpu.dot_dimension_numbers<[1], [0], [0], [1], [0, 0, 1, 1], [], []>} : vector<16x128xbf16>, vector<128x128xbf16>, vector<16x128xf32> -> vector<16x128xf32>
    %c7 = arith.constant 7 : index
    %c0_13 = arith.constant 0 : index
    %13 = vector.load %arg9[%c7, %c0_13] : memref<32x128xbf16, #tpu.memory_space<vmem>>, vector<16x128xbf16>
    %c0_14 = arith.constant 0 : index
    %c1 = arith.constant 1 : index
    %c0_15 = arith.constant 0 : index
    %c0_16 = arith.constant 0 : index
    %14 = vector.load %arg2[%c0_14, %c1, %c0_15, %c0_16] : memref<5x5x128x128xbf16, #tpu.memory_space<vmem>>, vector<1x1x128x128xbf16>
    %15 = vector.shape_cast %14 : vector<1x1x128x128xbf16> to vector<128x128xbf16>
    %cst_17 = arith.constant dense<0.000000e+00> : vector<16x128xf32>
    %16 = tpu.matmul %13, %15, %cst_17 {dimension_numbers = #tpu.dot_dimension_numbers<[1], [0], [0], [1], [0, 0, 1, 1], [], []>} : vector<16x128xbf16>, vector<128x128xbf16>, vector<16x128xf32> -> vector<16x128xf32>
    %17 = arith.addf %12, %16 : vector<16x128xf32>
    %c8_18 = arith.constant 8 : index
    %c0_19 = arith.constant 0 : index
    %18 = vector.load %arg9[%c8_18, %c0_19] : memref<32x128xbf16, #tpu.memory_space<vmem>>, vector<16x128xbf16>
    %c0_20 = arith.constant 0 : index
    %c2 = arith.constant 2 : index
    %c0_21 = arith.constant 0 : index
    %c0_22 = arith.constant 0 : index
    %19 = vector.load %arg2[%c0_20, %c2, %c0_21, %c0_22] : memref<5x5x128x128xbf16, #tpu.memory_space<vmem>>, vector<1x1x128x128xbf16>
    %20 = vector.shape_cast %19 : vector<1x1x128x128xbf16> to vector<128x128xbf16>
    %cst_23 = arith.constant dense<0.000000e+00> : vector<16x128xf32>
    %21 = tpu.matmul %18, %20, %cst_23 {dimension_numbers = #tpu.dot_dimension_numbers<[1], [0], [0], [1], [0, 0, 1, 1], [], []>} : vector<16x128xbf16>, vector<128x128xbf16>, vector<16x128xf32> -> vector<16x128xf32>
    %22 = arith.addf %17, %21 : vector<16x128xf32>
    %c9 = arith.constant 9 : index
    %c0_24 = arith.constant 0 : index
    %23 = vector.load %arg9[%c9, %c0_24] : memref<32x128xbf16, #tpu.memory_space<vmem>>, vector<16x128xbf16>
    %c0_25 = arith.constant 0 : index
    %c3 = arith.constant 3 : index
    %c0_26 = arith.constant 0 : index
    %c0_27 = arith.constant 0 : index
    %24 = vector.load %arg2[%c0_25, %c3, %c0_26, %c0_27] : memref<5x5x128x128xbf16, #tpu.memory_space<vmem>>, vector<1x1x128x128xbf16>
    %25 = vector.shape_cast %24 : vector<1x1x128x128xbf16> to vector<128x128xbf16>
    %cst_28 = arith.constant dense<0.000000e+00> : vector<16x128xf32>
    %26 = tpu.matmul %23, %25, %cst_28 {dimension_numbers = #tpu.dot_dimension_numbers<[1], [0], [0], [1], [0, 0, 1, 1], [], []>} : vector<16x128xbf16>, vector<128x128xbf16>, vector<16x128xf32> -> vector<16x128xf32>
    %27 = arith.addf %22, %26 : vector<16x128xf32>
    %c10 = arith.constant 10 : index
    %c0_29 = arith.constant 0 : index
    %28 = vector.load %arg9[%c10, %c0_29] : memref<32x128xbf16, #tpu.memory_space<vmem>>, vector<16x128xbf16>
    %c0_30 = arith.constant 0 : index
    %c4 = arith.constant 4 : index
    %c0_31 = arith.constant 0 : index
    %c0_32 = arith.constant 0 : index
    %29 = vector.load %arg2[%c0_30, %c4, %c0_31, %c0_32] : memref<5x5x128x128xbf16, #tpu.memory_space<vmem>>, vector<1x1x128x128xbf16>
    %30 = vector.shape_cast %29 : vector<1x1x128x128xbf16> to vector<128x128xbf16>
    %cst_33 = arith.constant dense<0.000000e+00> : vector<16x128xf32>
    %31 = tpu.matmul %28, %30, %cst_33 {dimension_numbers = #tpu.dot_dimension_numbers<[1], [0], [0], [1], [0, 0, 1, 1], [], []>} : vector<16x128xbf16>, vector<128x128xbf16>, vector<16x128xf32> -> vector<16x128xf32>
    %32 = arith.addf %27, %31 : vector<16x128xf32>
    %c0_34 = arith.constant 0 : index
    %c0_35 = arith.constant 0 : index
    %c0_36 = arith.constant 0 : index
    %33 = vector.load %arg3[%c0_34, %c0_35, %c0_36] : memref<5x1x128xf32, #tpu.memory_space<vmem>>, vector<1x1x128xf32>
    %34 = vector.shape_cast %33 : vector<1x1x128xf32> to vector<1x128xf32>
    %35 = vector.broadcast %34 : vector<1x128xf32> to vector<16x128xf32>
    %36 = arith.addf %32, %35 : vector<16x128xf32>
    %cst_37 = arith.constant 0.000000e+00 : f32
    %37 = vector.broadcast %cst_37 : f32 to vector<16x128xf32>
    %38 = arith.maximumf %36, %37 : vector<16x128xf32>
    %cst_38 = arith.constant dense<0.000000e+00> : vector<16xf32>
    %39 = vector.multi_reduction <add>, %38, %cst_38 [1] : vector<16x128xf32> to vector<16xf32>
    %40 = vector.shape_cast %39 : vector<16xf32> to vector<16x1xf32>
    %cst_39 = arith.constant 3.125000e-02 : f32
    %41 = vector.broadcast %cst_39 : f32 to vector<16x1xf32>
    %42 = arith.mulf %40, %41 : vector<16x1xf32>
    %43 = arith.mulf %38, %38 : vector<16x128xf32>
    %cst_40 = arith.constant dense<0.000000e+00> : vector<16xf32>
    %44 = vector.multi_reduction <add>, %43, %cst_40 [1] : vector<16x128xf32> to vector<16xf32>
    %45 = vector.shape_cast %44 : vector<16xf32> to vector<16x1xf32>
    %cst_41 = arith.constant 3.125000e-02 : f32
    %46 = vector.broadcast %cst_41 : f32 to vector<16x1xf32>
    %47 = arith.mulf %45, %46 : vector<16x1xf32>
    %48 = arith.mulf %42, %42 : vector<16x1xf32>
    %49 = arith.subf %47, %48 : vector<16x1xf32>
    %50 = vector.broadcast %42 : vector<16x1xf32> to vector<16x128xf32>
    %51 = arith.subf %38, %50 : vector<16x128xf32>
    %cst_42 = arith.constant 9.99999974E-6 : f32
    %52 = vector.broadcast %cst_42 : f32 to vector<16x1xf32>
    %53 = arith.addf %49, %52 : vector<16x1xf32>
    %54 = math.rsqrt %53 : vector<16x1xf32>
    %55 = vector.broadcast %54 : vector<16x1xf32> to vector<16x128xf32>
    %56 = arith.mulf %51, %55 : vector<16x128xf32>
    %c0_43 = arith.constant 0 : index
    %c0_44 = arith.constant 0 : index
    %c0_45 = arith.constant 0 : index
    %57 = vector.load %arg4[%c0_43, %c0_44, %c0_45] : memref<5x1x128xf32, #tpu.memory_space<vmem>>, vector<1x1x128xf32>
    %58 = vector.shape_cast %57 : vector<1x1x128xf32> to vector<1x128xf32>
    %59 = vector.broadcast %58 : vector<1x128xf32> to vector<16x128xf32>
    %60 = arith.mulf %56, %59 : vector<16x128xf32>
    %c0_46 = arith.constant 0 : index
    %c0_47 = arith.constant 0 : index
    %c0_48 = arith.constant 0 : index
    %61 = vector.load %arg5[%c0_46, %c0_47, %c0_48] : memref<5x1x128xf32, #tpu.memory_space<vmem>>, vector<1x1x128xf32>
    %62 = vector.shape_cast %61 : vector<1x1x128xf32> to vector<1x128xf32>
    %63 = vector.broadcast %62 : vector<1x128xf32> to vector<16x128xf32>
    %64 = arith.addf %60, %63 : vector<16x128xf32>
    %65 = arith.truncf %64 : vector<16x128xf32> to vector<16x128xbf16>
    %c8_49 = arith.constant 8 : index
    %c0_50 = arith.constant 0 : index
    %66 = vector.load %arg9[%c8_49, %c0_50] : memref<32x128xbf16, #tpu.memory_space<vmem>>, vector<16x128xbf16>
    tpu.vector_store %arg9[%c8_49, %c0_50], %65 {strides = array<i32>} : memref<32x128xbf16, #tpu.memory_space<vmem>>, vector<16x128xbf16>,
    %c6_51 = arith.constant 6 : index
    %c0_52 = arith.constant 0 : index
    %67 = vector.load %arg9[%c6_51, %c0_52] : memref<32x128xbf16, #tpu.memory_space<vmem>>, vector<16x128xbf16>
    %c1_53 = arith.constant 1 : index
    %c0_54 = arith.constant 0 : index
    %c0_55 = arith.constant 0 : index
    %c0_56 = arith.constant 0 : index
    %68 = vector.load %arg2[%c1_53, %c0_54, %c0_55, %c0_56] : memref<5x5x128x128xbf16, #tpu.memory_space<vmem>>, vector<1x1x128x128xbf16>
    %69 = vector.shape_cast %68 : vector<1x1x128x128xbf16> to vector<128x128xbf16>
    %cst_57 = arith.constant dense<0.000000e+00> : vector<16x128xf32>
    %70 = tpu.matmul %67, %69, %cst_57 {dimension_numbers = #tpu.dot_dimension_numbers<[1], [0], [0], [1], [0, 0, 1, 1], [], []>} : vector<16x128xbf16>, vector<128x128xbf16>, vector<16x128xf32> -> vector<16x128xf32>
    %c7_58 = arith.constant 7 : index
    %c0_59 = arith.constant 0 : index
    %71 = vector.load %arg9[%c7_58, %c0_59] : memref<32x128xbf16, #tpu.memory_space<vmem>>, vector<16x128xbf16>
    %c1_60 = arith.constant 1 : index
    %c1_61 = arith.constant 1 : index
    %c0_62 = arith.constant 0 : index
    %c0_63 = arith.constant 0 : index
    %72 = vector.load %arg2[%c1_60, %c1_61, %c0_62, %c0_63] : memref<5x5x128x128xbf16, #tpu.memory_space<vmem>>, vector<1x1x128x128xbf16>
    %73 = vector.shape_cast %72 : vector<1x1x128x128xbf16> to vector<128x128xbf16>
    %cst_64 = arith.constant dense<0.000000e+00> : vector<16x128xf32>
    %74 = tpu.matmul %71, %73, %cst_64 {dimension_numbers = #tpu.dot_dimension_numbers<[1], [0], [0], [1], [0, 0, 1, 1], [], []>} : vector<16x128xbf16>, vector<128x128xbf16>, vector<16x128xf32> -> vector<16x128xf32>
    %75 = arith.addf %70, %74 : vector<16x128xf32>
    %c8_65 = arith.constant 8 : index
    %c0_66 = arith.constant 0 : index
    %76 = vector.load %arg9[%c8_65, %c0_66] : memref<32x128xbf16, #tpu.memory_space<vmem>>, vector<16x128xbf16>
    %c1_67 = arith.constant 1 : index
    %c2_68 = arith.constant 2 : index
    %c0_69 = arith.constant 0 : index
    %c0_70 = arith.constant 0 : index
    %77 = vector.load %arg2[%c1_67, %c2_68, %c0_69, %c0_70] : memref<5x5x128x128xbf16, #tpu.memory_space<vmem>>, vector<1x1x128x128xbf16>
    %78 = vector.shape_cast %77 : vector<1x1x128x128xbf16> to vector<128x128xbf16>
    %cst_71 = arith.constant dense<0.000000e+00> : vector<16x128xf32>
    %79 = tpu.matmul %76, %78, %cst_71 {dimension_numbers = #tpu.dot_dimension_numbers<[1], [0], [0], [1], [0, 0, 1, 1], [], []>} : vector<16x128xbf16>, vector<128x128xbf16>, vector<16x128xf32> -> vector<16x128xf32>
    %80 = arith.addf %75, %79 : vector<16x128xf32>
    %c9_72 = arith.constant 9 : index
    %c0_73 = arith.constant 0 : index
    %81 = vector.load %arg9[%c9_72, %c0_73] : memref<32x128xbf16, #tpu.memory_space<vmem>>, vector<16x128xbf16>
    %c1_74 = arith.constant 1 : index
    %c3_75 = arith.constant 3 : index
    %c0_76 = arith.constant 0 : index
    %c0_77 = arith.constant 0 : index
    %82 = vector.load %arg2[%c1_74, %c3_75, %c0_76, %c0_77] : memref<5x5x128x128xbf16, #tpu.memory_space<vmem>>, vector<1x1x128x128xbf16>
    %83 = vector.shape_cast %82 : vector<1x1x128x128xbf16> to vector<128x128xbf16>
    %cst_78 = arith.constant dense<0.000000e+00> : vector<16x128xf32>
    %84 = tpu.matmul %81, %83, %cst_78 {dimension_numbers = #tpu.dot_dimension_numbers<[1], [0], [0], [1], [0, 0, 1, 1], [], []>} : vector<16x128xbf16>, vector<128x128xbf16>, vector<16x128xf32> -> vector<16x128xf32>
    %85 = arith.addf %80, %84 : vector<16x128xf32>
    %c10_79 = arith.constant 10 : index
    %c0_80 = arith.constant 0 : index
    %86 = vector.load %arg9[%c10_79, %c0_80] : memref<32x128xbf16, #tpu.memory_space<vmem>>, vector<16x128xbf16>
    %c1_81 = arith.constant 1 : index
    %c4_82 = arith.constant 4 : index
    %c0_83 = arith.constant 0 : index
    %c0_84 = arith.constant 0 : index
    %87 = vector.load %arg2[%c1_81, %c4_82, %c0_83, %c0_84] : memref<5x5x128x128xbf16, #tpu.memory_space<vmem>>, vector<1x1x128x128xbf16>
    %88 = vector.shape_cast %87 : vector<1x1x128x128xbf16> to vector<128x128xbf16>
    %cst_85 = arith.constant dense<0.000000e+00> : vector<16x128xf32>
    %89 = tpu.matmul %86, %88, %cst_85 {dimension_numbers = #tpu.dot_dimension_numbers<[1], [0], [0], [1], [0, 0, 1, 1], [], []>} : vector<16x128xbf16>, vector<128x128xbf16>, vector<16x128xf32> -> vector<16x128xf32>
    %90 = arith.addf %85, %89 : vector<16x128xf32>
    %c1_86 = arith.constant 1 : index
    %c0_87 = arith.constant 0 : index
    %c0_88 = arith.constant 0 : index
    %91 = vector.load %arg3[%c1_86, %c0_87, %c0_88] : memref<5x1x128xf32, #tpu.memory_space<vmem>>, vector<1x1x128xf32>
    %92 = vector.shape_cast %91 : vector<1x1x128xf32> to vector<1x128xf32>
    %93 = vector.broadcast %92 : vector<1x128xf32> to vector<16x128xf32>
    %94 = arith.addf %90, %93 : vector<16x128xf32>
    %cst_89 = arith.constant 0.000000e+00 : f32
    %95 = vector.broadcast %cst_89 : f32 to vector<16x128xf32>
    %96 = arith.maximumf %94, %95 : vector<16x128xf32>
    %cst_90 = arith.constant dense<0.000000e+00> : vector<16xf32>
    %97 = vector.multi_reduction <add>, %96, %cst_90 [1] : vector<16x128xf32> to vector<16xf32>
    %98 = vector.shape_cast %97 : vector<16xf32> to vector<16x1xf32>
    %cst_91 = arith.constant 3.125000e-02 : f32
    %99 = vector.broadcast %cst_91 : f32 to vector<16x1xf32>
    %100 = arith.mulf %98, %99 : vector<16x1xf32>
    %101 = arith.mulf %96, %96 : vector<16x128xf32>
    %cst_92 = arith.constant dense<0.000000e+00> : vector<16xf32>
    %102 = vector.multi_reduction <add>, %101, %cst_92 [1] : vector<16x128xf32> to vector<16xf32>
    %103 = vector.shape_cast %102 : vector<16xf32> to vector<16x1xf32>
    %cst_93 = arith.constant 3.125000e-02 : f32
    %104 = vector.broadcast %cst_93 : f32 to vector<16x1xf32>
    %105 = arith.mulf %103, %104 : vector<16x1xf32>
    %106 = arith.mulf %100, %100 : vector<16x1xf32>
    %107 = arith.subf %105, %106 : vector<16x1xf32>
    %108 = vector.broadcast %100 : vector<16x1xf32> to vector<16x128xf32>
    %109 = arith.subf %96, %108 : vector<16x128xf32>
    %cst_94 = arith.constant 9.99999974E-6 : f32
    %110 = vector.broadcast %cst_94 : f32 to vector<16x1xf32>
    %111 = arith.addf %107, %110 : vector<16x1xf32>
    %112 = math.rsqrt %111 : vector<16x1xf32>
    %113 = vector.broadcast %112 : vector<16x1xf32> to vector<16x128xf32>
    %114 = arith.mulf %109, %113 : vector<16x128xf32>
    %c1_95 = arith.constant 1 : index
    %c0_96 = arith.constant 0 : index
    %c0_97 = arith.constant 0 : index
    %115 = vector.load %arg4[%c1_95, %c0_96, %c0_97] : memref<5x1x128xf32, #tpu.memory_space<vmem>>, vector<1x1x128xf32>
    %116 = vector.shape_cast %115 : vector<1x1x128xf32> to vector<1x128xf32>
    %117 = vector.broadcast %116 : vector<1x128xf32> to vector<16x128xf32>
    %118 = arith.mulf %114, %117 : vector<16x128xf32>
    %c1_98 = arith.constant 1 : index
    %c0_99 = arith.constant 0 : index
    %c0_100 = arith.constant 0 : index
    %119 = vector.load %arg5[%c1_98, %c0_99, %c0_100] : memref<5x1x128xf32, #tpu.memory_space<vmem>>, vector<1x1x128xf32>
    %120 = vector.shape_cast %119 : vector<1x1x128xf32> to vector<1x128xf32>
    %121 = vector.broadcast %120 : vector<1x128xf32> to vector<16x128xf32>
    %122 = arith.addf %118, %121 : vector<16x128xf32>
    %123 = arith.truncf %122 : vector<16x128xf32> to vector<16x128xbf16>
    %c8_101 = arith.constant 8 : index
    %c0_102 = arith.constant 0 : index
    %124 = vector.load %arg9[%c8_101, %c0_102] : memref<32x128xbf16, #tpu.memory_space<vmem>>, vector<16x128xbf16>
    tpu.vector_store %arg9[%c8_101, %c0_102], %123 {strides = array<i32>} : memref<32x128xbf16, #tpu.memory_space<vmem>>, vector<16x128xbf16>,
    %c6_103 = arith.constant 6 : index
    %c0_104 = arith.constant 0 : index
    %125 = vector.load %arg9[%c6_103, %c0_104] : memref<32x128xbf16, #tpu.memory_space<vmem>>, vector<16x128xbf16>
    %c2_105 = arith.constant 2 : index
    %c0_106 = arith.constant 0 : index
    %c0_107 = arith.constant 0 : index
    %c0_108 = arith.constant 0 : index
    %126 = vector.load %arg2[%c2_105, %c0_106, %c0_107, %c0_108] : memref<5x5x128x128xbf16, #tpu.memory_space<vmem>>, vector<1x1x128x128xbf16>
    %127 = vector.shape_cast %126 : vector<1x1x128x128xbf16> to vector<128x128xbf16>
    %cst_109 = arith.constant dense<0.000000e+00> : vector<16x128xf32>
    %128 = tpu.matmul %125, %127, %cst_109 {dimension_numbers = #tpu.dot_dimension_numbers<[1], [0], [0], [1], [0, 0, 1, 1], [], []>} : vector<16x128xbf16>, vector<128x128xbf16>, vector<16x128xf32> -> vector<16x128xf32>
    %c7_110 = arith.constant 7 : index
    %c0_111 = arith.constant 0 : index
    %129 = vector.load %arg9[%c7_110, %c0_111] : memref<32x128xbf16, #tpu.memory_space<vmem>>, vector<16x128xbf16>
    %c2_112 = arith.constant 2 : index
    %c1_113 = arith.constant 1 : index
    %c0_114 = arith.constant 0 : index
    %c0_115 = arith.constant 0 : index
    %130 = vector.load %arg2[%c2_112, %c1_113, %c0_114, %c0_115] : memref<5x5x128x128xbf16, #tpu.memory_space<vmem>>, vector<1x1x128x128xbf16>
    %131 = vector.shape_cast %130 : vector<1x1x128x128xbf16> to vector<128x128xbf16>
    %cst_116 = arith.constant dense<0.000000e+00> : vector<16x128xf32>
    %132 = tpu.matmul %129, %131, %cst_116 {dimension_numbers = #tpu.dot_dimension_numbers<[1], [0], [0], [1], [0, 0, 1, 1], [], []>} : vector<16x128xbf16>, vector<128x128xbf16>, vector<16x128xf32> -> vector<16x128xf32>
    %133 = arith.addf %128, %132 : vector<16x128xf32>
    %c8_117 = arith.constant 8 : index
    %c0_118 = arith.constant 0 : index
    %134 = vector.load %arg9[%c8_117, %c0_118] : memref<32x128xbf16, #tpu.memory_space<vmem>>, vector<16x128xbf16>
    %c2_119 = arith.constant 2 : index
    %c2_120 = arith.constant 2 : index
    %c0_121 = arith.constant 0 : index
    %c0_122 = arith.constant 0 : index
    %135 = vector.load %arg2[%c2_119, %c2_120, %c0_121, %c0_122] : memref<5x5x128x128xbf16, #tpu.memory_space<vmem>>, vector<1x1x128x128xbf16>
    %136 = vector.shape_cast %135 : vector<1x1x128x128xbf16> to vector<128x128xbf16>
    %cst_123 = arith.constant dense<0.000000e+00> : vector<16x128xf32>
    %137 = tpu.matmul %134, %136, %cst_123 {dimension_numbers = #tpu.dot_dimension_numbers<[1], [0], [0], [1], [0, 0, 1, 1], [], []>} : vector<16x128xbf16>, vector<128x128xbf16>, vector<16x128xf32> -> vector<16x128xf32>
    %138 = arith.addf %133, %137 : vector<16x128xf32>
    %c9_124 = arith.constant 9 : index
    %c0_125 = arith.constant 0 : index
    %139 = vector.load %arg9[%c9_124, %c0_125] : memref<32x128xbf16, #tpu.memory_space<vmem>>, vector<16x128xbf16>
    %c2_126 = arith.constant 2 : index
    %c3_127 = arith.constant 3 : index
    %c0_128 = arith.constant 0 : index
    %c0_129 = arith.constant 0 : index
    %140 = vector.load %arg2[%c2_126, %c3_127, %c0_128, %c0_129] : memref<5x5x128x128xbf16, #tpu.memory_space<vmem>>, vector<1x1x128x128xbf16>
    %141 = vector.shape_cast %140 : vector<1x1x128x128xbf16> to vector<128x128xbf16>
    %cst_130 = arith.constant dense<0.000000e+00> : vector<16x128xf32>
    %142 = tpu.matmul %139, %141, %cst_130 {dimension_numbers = #tpu.dot_dimension_numbers<[1], [0], [0], [1], [0, 0, 1, 1], [], []>} : vector<16x128xbf16>, vector<128x128xbf16>, vector<16x128xf32> -> vector<16x128xf32>
    %143 = arith.addf %138, %142 : vector<16x128xf32>
    %c10_131 = arith.constant 10 : index
    %c0_132 = arith.constant 0 : index
    %144 = vector.load %arg9[%c10_131, %c0_132] : memref<32x128xbf16, #tpu.memory_space<vmem>>, vector<16x128xbf16>
    %c2_133 = arith.constant 2 : index
    %c4_134 = arith.constant 4 : index
    %c0_135 = arith.constant 0 : index
    %c0_136 = arith.constant 0 : index
    %145 = vector.load %arg2[%c2_133, %c4_134, %c0_135, %c0_136] : memref<5x5x128x128xbf16, #tpu.memory_space<vmem>>, vector<1x1x128x128xbf16>
    %146 = vector.shape_cast %145 : vector<1x1x128x128xbf16> to vector<128x128xbf16>
    %cst_137 = arith.constant dense<0.000000e+00> : vector<16x128xf32>
    %147 = tpu.matmul %144, %146, %cst_137 {dimension_numbers = #tpu.dot_dimension_numbers<[1], [0], [0], [1], [0, 0, 1, 1], [], []>} : vector<16x128xbf16>, vector<128x128xbf16>, vector<16x128xf32> -> vector<16x128xf32>
    %148 = arith.addf %143, %147 : vector<16x128xf32>
    %c2_138 = arith.constant 2 : index
    %c0_139 = arith.constant 0 : index
    %c0_140 = arith.constant 0 : index
    %149 = vector.load %arg3[%c2_138, %c0_139, %c0_140] : memref<5x1x128xf32, #tpu.memory_space<vmem>>, vector<1x1x128xf32>
    %150 = vector.shape_cast %149 : vector<1x1x128xf32> to vector<1x128xf32>
    %151 = vector.broadcast %150 : vector<1x128xf32> to vector<16x128xf32>
    %152 = arith.addf %148, %151 : vector<16x128xf32>
    %cst_141 = arith.constant 0.000000e+00 : f32
    %153 = vector.broadcast %cst_141 : f32 to vector<16x128xf32>
    %154 = arith.maximumf %152, %153 : vector<16x128xf32>
    %cst_142 = arith.constant dense<0.000000e+00> : vector<16xf32>
    %155 = vector.multi_reduction <add>, %154, %cst_142 [1] : vector<16x128xf32> to vector<16xf32>
    %156 = vector.shape_cast %155 : vector<16xf32> to vector<16x1xf32>
    %cst_143 = arith.constant 3.125000e-02 : f32
    %157 = vector.broadcast %cst_143 : f32 to vector<16x1xf32>
    %158 = arith.mulf %156, %157 : vector<16x1xf32>
    %159 = arith.mulf %154, %154 : vector<16x128xf32>
    %cst_144 = arith.constant dense<0.000000e+00> : vector<16xf32>
    %160 = vector.multi_reduction <add>, %159, %cst_144 [1] : vector<16x128xf32> to vector<16xf32>
    %161 = vector.shape_cast %160 : vector<16xf32> to vector<16x1xf32>
    %cst_145 = arith.constant 3.125000e-02 : f32
    %162 = vector.broadcast %cst_145 : f32 to vector<16x1xf32>
    %163 = arith.mulf %161, %162 : vector<16x1xf32>
    %164 = arith.mulf %158, %158 : vector<16x1xf32>
    %165 = arith.subf %163, %164 : vector<16x1xf32>
    %166 = vector.broadcast %158 : vector<16x1xf32> to vector<16x128xf32>
    %167 = arith.subf %154, %166 : vector<16x128xf32>
    %cst_146 = arith.constant 9.99999974E-6 : f32
    %168 = vector.broadcast %cst_146 : f32 to vector<16x1xf32>
    %169 = arith.addf %165, %168 : vector<16x1xf32>
    %170 = math.rsqrt %169 : vector<16x1xf32>
    %171 = vector.broadcast %170 : vector<16x1xf32> to vector<16x128xf32>
    %172 = arith.mulf %167, %171 : vector<16x128xf32>
    %c2_147 = arith.constant 2 : index
    %c0_148 = arith.constant 0 : index
    %c0_149 = arith.constant 0 : index
    %173 = vector.load %arg4[%c2_147, %c0_148, %c0_149] : memref<5x1x128xf32, #tpu.memory_space<vmem>>, vector<1x1x128xf32>
    %174 = vector.shape_cast %173 : vector<1x1x128xf32> to vector<1x128xf32>
    %175 = vector.broadcast %174 : vector<1x128xf32> to vector<16x128xf32>
    %176 = arith.mulf %172, %175 : vector<16x128xf32>
    %c2_150 = arith.constant 2 : index
    %c0_151 = arith.constant 0 : index
    %c0_152 = arith.constant 0 : index
    %177 = vector.load %arg5[%c2_150, %c0_151, %c0_152] : memref<5x1x128xf32, #tpu.memory_space<vmem>>, vector<1x1x128xf32>
    %178 = vector.shape_cast %177 : vector<1x1x128xf32> to vector<1x128xf32>
    %179 = vector.broadcast %178 : vector<1x128xf32> to vector<16x128xf32>
    %180 = arith.addf %176, %179 : vector<16x128xf32>
    %181 = arith.truncf %180 : vector<16x128xf32> to vector<16x128xbf16>
    %c8_153 = arith.constant 8 : index
    %c0_154 = arith.constant 0 : index
    %182 = vector.load %arg9[%c8_153, %c0_154] : memref<32x128xbf16, #tpu.memory_space<vmem>>, vector<16x128xbf16>
    tpu.vector_store %arg9[%c8_153, %c0_154], %181 {strides = array<i32>} : memref<32x128xbf16, #tpu.memory_space<vmem>>, vector<16x128xbf16>,
    %c6_155 = arith.constant 6 : index
    %c0_156 = arith.constant 0 : index
    %183 = vector.load %arg9[%c6_155, %c0_156] : memref<32x128xbf16, #tpu.memory_space<vmem>>, vector<16x128xbf16>
    %c3_157 = arith.constant 3 : index
    %c0_158 = arith.constant 0 : index
    %c0_159 = arith.constant 0 : index
    %c0_160 = arith.constant 0 : index
    %184 = vector.load %arg2[%c3_157, %c0_158, %c0_159, %c0_160] : memref<5x5x128x128xbf16, #tpu.memory_space<vmem>>, vector<1x1x128x128xbf16>
    %185 = vector.shape_cast %184 : vector<1x1x128x128xbf16> to vector<128x128xbf16>
    %cst_161 = arith.constant dense<0.000000e+00> : vector<16x128xf32>
    %186 = tpu.matmul %183, %185, %cst_161 {dimension_numbers = #tpu.dot_dimension_numbers<[1], [0], [0], [1], [0, 0, 1, 1], [], []>} : vector<16x128xbf16>, vector<128x128xbf16>, vector<16x128xf32> -> vector<16x128xf32>
    %c7_162 = arith.constant 7 : index
    %c0_163 = arith.constant 0 : index
    %187 = vector.load %arg9[%c7_162, %c0_163] : memref<32x128xbf16, #tpu.memory_space<vmem>>, vector<16x128xbf16>
    %c3_164 = arith.constant 3 : index
    %c1_165 = arith.constant 1 : index
    %c0_166 = arith.constant 0 : index
    %c0_167 = arith.constant 0 : index
    %188 = vector.load %arg2[%c3_164, %c1_165, %c0_166, %c0_167] : memref<5x5x128x128xbf16, #tpu.memory_space<vmem>>, vector<1x1x128x128xbf16>
    %189 = vector.shape_cast %188 : vector<1x1x128x128xbf16> to vector<128x128xbf16>
    %cst_168 = arith.constant dense<0.000000e+00> : vector<16x128xf32>
    %190 = tpu.matmul %187, %189, %cst_168 {dimension_numbers = #tpu.dot_dimension_numbers<[1], [0], [0], [1], [0, 0, 1, 1], [], []>} : vector<16x128xbf16>, vector<128x128xbf16>, vector<16x128xf32> -> vector<16x128xf32>
    %191 = arith.addf %186, %190 : vector<16x128xf32>
    %c8_169 = arith.constant 8 : index
    %c0_170 = arith.constant 0 : index
    %192 = vector.load %arg9[%c8_169, %c0_170] : memref<32x128xbf16, #tpu.memory_space<vmem>>, vector<16x128xbf16>
    %c3_171 = arith.constant 3 : index
    %c2_172 = arith.constant 2 : index
    %c0_173 = arith.constant 0 : index
    %c0_174 = arith.constant 0 : index
    %193 = vector.load %arg2[%c3_171, %c2_172, %c0_173, %c0_174] : memref<5x5x128x128xbf16, #tpu.memory_space<vmem>>, vector<1x1x128x128xbf16>
    %194 = vector.shape_cast %193 : vector<1x1x128x128xbf16> to vector<128x128xbf16>
    %cst_175 = arith.constant dense<0.000000e+00> : vector<16x128xf32>
    %195 = tpu.matmul %192, %194, %cst_175 {dimension_numbers = #tpu.dot_dimension_numbers<[1], [0], [0], [1], [0, 0, 1, 1], [], []>} : vector<16x128xbf16>, vector<128x128xbf16>, vector<16x128xf32> -> vector<16x128xf32>
    %196 = arith.addf %191, %195 : vector<16x128xf32>
    %c9_176 = arith.constant 9 : index
    %c0_177 = arith.constant 0 : index
    %197 = vector.load %arg9[%c9_176, %c0_177] : memref<32x128xbf16, #tpu.memory_space<vmem>>, vector<16x128xbf16>
    %c3_178 = arith.constant 3 : index
    %c3_179 = arith.constant 3 : index
    %c0_180 = arith.constant 0 : index
    %c0_181 = arith.constant 0 : index
    %198 = vector.load %arg2[%c3_178, %c3_179, %c0_180, %c0_181] : memref<5x5x128x128xbf16, #tpu.memory_space<vmem>>, vector<1x1x128x128xbf16>
    %199 = vector.shape_cast %198 : vector<1x1x128x128xbf16> to vector<128x128xbf16>
    %cst_182 = arith.constant dense<0.000000e+00> : vector<16x128xf32>
    %200 = tpu.matmul %197, %199, %cst_182 {dimension_numbers = #tpu.dot_dimension_numbers<[1], [0], [0], [1], [0, 0, 1, 1], [], []>} : vector<16x128xbf16>, vector<128x128xbf16>, vector<16x128xf32> -> vector<16x128xf32>
    %201 = arith.addf %196, %200 : vector<16x128xf32>
    %c10_183 = arith.constant 10 : index
    %c0_184 = arith.constant 0 : index
    %202 = vector.load %arg9[%c10_183, %c0_184] : memref<32x128xbf16, #tpu.memory_space<vmem>>, vector<16x128xbf16>
    %c3_185 = arith.constant 3 : index
    %c4_186 = arith.constant 4 : index
    %c0_187 = arith.constant 0 : index
    %c0_188 = arith.constant 0 : index
    %203 = vector.load %arg2[%c3_185, %c4_186, %c0_187, %c0_188] : memref<5x5x128x128xbf16, #tpu.memory_space<vmem>>, vector<1x1x128x128xbf16>
    %204 = vector.shape_cast %203 : vector<1x1x128x128xbf16> to vector<128x128xbf16>
    %cst_189 = arith.constant dense<0.000000e+00> : vector<16x128xf32>
    %205 = tpu.matmul %202, %204, %cst_189 {dimension_numbers = #tpu.dot_dimension_numbers<[1], [0], [0], [1], [0, 0, 1, 1], [], []>} : vector<16x128xbf16>, vector<128x128xbf16>, vector<16x128xf32> -> vector<16x128xf32>
    %206 = arith.addf %201, %205 : vector<16x128xf32>
    %c3_190 = arith.constant 3 : index
    %c0_191 = arith.constant 0 : index
    %c0_192 = arith.constant 0 : index
    %207 = vector.load %arg3[%c3_190, %c0_191, %c0_192] : memref<5x1x128xf32, #tpu.memory_space<vmem>>, vector<1x1x128xf32>
    %208 = vector.shape_cast %207 : vector<1x1x128xf32> to vector<1x128xf32>
    %209 = vector.broadcast %208 : vector<1x128xf32> to vector<16x128xf32>
    %210 = arith.addf %206, %209 : vector<16x128xf32>
    %cst_193 = arith.constant 0.000000e+00 : f32
    %211 = vector.broadcast %cst_193 : f32 to vector<16x128xf32>
    %212 = arith.maximumf %210, %211 : vector<16x128xf32>
    %cst_194 = arith.constant dense<0.000000e+00> : vector<16xf32>
    %213 = vector.multi_reduction <add>, %212, %cst_194 [1] : vector<16x128xf32> to vector<16xf32>
    %214 = vector.shape_cast %213 : vector<16xf32> to vector<16x1xf32>
    %cst_195 = arith.constant 3.125000e-02 : f32
    %215 = vector.broadcast %cst_195 : f32 to vector<16x1xf32>
    %216 = arith.mulf %214, %215 : vector<16x1xf32>
    %217 = arith.mulf %212, %212 : vector<16x128xf32>
    %cst_196 = arith.constant dense<0.000000e+00> : vector<16xf32>
    %218 = vector.multi_reduction <add>, %217, %cst_196 [1] : vector<16x128xf32> to vector<16xf32>
    %219 = vector.shape_cast %218 : vector<16xf32> to vector<16x1xf32>
    %cst_197 = arith.constant 3.125000e-02 : f32
    %220 = vector.broadcast %cst_197 : f32 to vector<16x1xf32>
    %221 = arith.mulf %219, %220 : vector<16x1xf32>
    %222 = arith.mulf %216, %216 : vector<16x1xf32>
    %223 = arith.subf %221, %222 : vector<16x1xf32>
    %224 = vector.broadcast %216 : vector<16x1xf32> to vector<16x128xf32>
    %225 = arith.subf %212, %224 : vector<16x128xf32>
    %cst_198 = arith.constant 9.99999974E-6 : f32
    %226 = vector.broadcast %cst_198 : f32 to vector<16x1xf32>
    %227 = arith.addf %223, %226 : vector<16x1xf32>
    %228 = math.rsqrt %227 : vector<16x1xf32>
    %229 = vector.broadcast %228 : vector<16x1xf32> to vector<16x128xf32>
    %230 = arith.mulf %225, %229 : vector<16x128xf32>
    %c3_199 = arith.constant 3 : index
    %c0_200 = arith.constant 0 : index
    %c0_201 = arith.constant 0 : index
    %231 = vector.load %arg4[%c3_199, %c0_200, %c0_201] : memref<5x1x128xf32, #tpu.memory_space<vmem>>, vector<1x1x128xf32>
    %232 = vector.shape_cast %231 : vector<1x1x128xf32> to vector<1x128xf32>
    %233 = vector.broadcast %232 : vector<1x128xf32> to vector<16x128xf32>
    %234 = arith.mulf %230, %233 : vector<16x128xf32>
    %c3_202 = arith.constant 3 : index
    %c0_203 = arith.constant 0 : index
    %c0_204 = arith.constant 0 : index
    %235 = vector.load %arg5[%c3_202, %c0_203, %c0_204] : memref<5x1x128xf32, #tpu.memory_space<vmem>>, vector<1x1x128xf32>
    %236 = vector.shape_cast %235 : vector<1x1x128xf32> to vector<1x128xf32>
    %237 = vector.broadcast %236 : vector<1x128xf32> to vector<16x128xf32>
    %238 = arith.addf %234, %237 : vector<16x128xf32>
    %239 = arith.truncf %238 : vector<16x128xf32> to vector<16x128xbf16>
    %c8_205 = arith.constant 8 : index
    %c0_206 = arith.constant 0 : index
    %240 = vector.load %arg9[%c8_205, %c0_206] : memref<32x128xbf16, #tpu.memory_space<vmem>>, vector<16x128xbf16>
    tpu.vector_store %arg9[%c8_205, %c0_206], %239 {strides = array<i32>} : memref<32x128xbf16, #tpu.memory_space<vmem>>, vector<16x128xbf16>,
    %c6_207 = arith.constant 6 : index
    %c0_208 = arith.constant 0 : index
    %241 = vector.load %arg9[%c6_207, %c0_208] : memref<32x128xbf16, #tpu.memory_space<vmem>>, vector<16x128xbf16>
    %c4_209 = arith.constant 4 : index
    %c0_210 = arith.constant 0 : index
    %c0_211 = arith.constant 0 : index
    %c0_212 = arith.constant 0 : index
    %242 = vector.load %arg2[%c4_209, %c0_210, %c0_211, %c0_212] : memref<5x5x128x128xbf16, #tpu.memory_space<vmem>>, vector<1x1x128x128xbf16>
    %243 = vector.shape_cast %242 : vector<1x1x128x128xbf16> to vector<128x128xbf16>
    %cst_213 = arith.constant dense<0.000000e+00> : vector<16x128xf32>
    %244 = tpu.matmul %241, %243, %cst_213 {dimension_numbers = #tpu.dot_dimension_numbers<[1], [0], [0], [1], [0, 0, 1, 1], [], []>} : vector<16x128xbf16>, vector<128x128xbf16>, vector<16x128xf32> -> vector<16x128xf32>
    %c7_214 = arith.constant 7 : index
    %c0_215 = arith.constant 0 : index
    %245 = vector.load %arg9[%c7_214, %c0_215] : memref<32x128xbf16, #tpu.memory_space<vmem>>, vector<16x128xbf16>
    %c4_216 = arith.constant 4 : index
    %c1_217 = arith.constant 1 : index
    %c0_218 = arith.constant 0 : index
    %c0_219 = arith.constant 0 : index
    %246 = vector.load %arg2[%c4_216, %c1_217, %c0_218, %c0_219] : memref<5x5x128x128xbf16, #tpu.memory_space<vmem>>, vector<1x1x128x128xbf16>
    %247 = vector.shape_cast %246 : vector<1x1x128x128xbf16> to vector<128x128xbf16>
    %cst_220 = arith.constant dense<0.000000e+00> : vector<16x128xf32>
    %248 = tpu.matmul %245, %247, %cst_220 {dimension_numbers = #tpu.dot_dimension_numbers<[1], [0], [0], [1], [0, 0, 1, 1], [], []>} : vector<16x128xbf16>, vector<128x128xbf16>, vector<16x128xf32> -> vector<16x128xf32>
    %249 = arith.addf %244, %248 : vector<16x128xf32>
    %c8_221 = arith.constant 8 : index
    %c0_222 = arith.constant 0 : index
    %250 = vector.load %arg9[%c8_221, %c0_222] : memref<32x128xbf16, #tpu.memory_space<vmem>>, vector<16x128xbf16>
    %c4_223 = arith.constant 4 : index
    %c2_224 = arith.constant 2 : index
    %c0_225 = arith.constant 0 : index
    %c0_226 = arith.constant 0 : index
    %251 = vector.load %arg2[%c4_223, %c2_224, %c0_225, %c0_226] : memref<5x5x128x128xbf16, #tpu.memory_space<vmem>>, vector<1x1x128x128xbf16>
    %252 = vector.shape_cast %251 : vector<1x1x128x128xbf16> to vector<128x128xbf16>
    %cst_227 = arith.constant dense<0.000000e+00> : vector<16x128xf32>
    %253 = tpu.matmul %250, %252, %cst_227 {dimension_numbers = #tpu.dot_dimension_numbers<[1], [0], [0], [1], [0, 0, 1, 1], [], []>} : vector<16x128xbf16>, vector<128x128xbf16>, vector<16x128xf32> -> vector<16x128xf32>
    %254 = arith.addf %249, %253 : vector<16x128xf32>
    %c9_228 = arith.constant 9 : index
    %c0_229 = arith.constant 0 : index
    %255 = vector.load %arg9[%c9_228, %c0_229] : memref<32x128xbf16, #tpu.memory_space<vmem>>, vector<16x128xbf16>
    %c4_230 = arith.constant 4 : index
    %c3_231 = arith.constant 3 : index
    %c0_232 = arith.constant 0 : index
    %c0_233 = arith.constant 0 : index
    %256 = vector.load %arg2[%c4_230, %c3_231, %c0_232, %c0_233] : memref<5x5x128x128xbf16, #tpu.memory_space<vmem>>, vector<1x1x128x128xbf16>
    %257 = vector.shape_cast %256 : vector<1x1x128x128xbf16> to vector<128x128xbf16>
    %cst_234 = arith.constant dense<0.000000e+00> : vector<16x128xf32>
    %258 = tpu.matmul %255, %257, %cst_234 {dimension_numbers = #tpu.dot_dimension_numbers<[1], [0], [0], [1], [0, 0, 1, 1], [], []>} : vector<16x128xbf16>, vector<128x128xbf16>, vector<16x128xf32> -> vector<16x128xf32>
    %259 = arith.addf %254, %258 : vector<16x128xf32>
    %c10_235 = arith.constant 10 : index
    %c0_236 = arith.constant 0 : index
    %260 = vector.load %arg9[%c10_235, %c0_236] : memref<32x128xbf16, #tpu.memory_space<vmem>>, vector<16x128xbf16>
    %c4_237 = arith.constant 4 : index
    %c4_238 = arith.constant 4 : index
    %c0_239 = arith.constant 0 : index
    %c0_240 = arith.constant 0 : index
    %261 = vector.load %arg2[%c4_237, %c4_238, %c0_239, %c0_240] : memref<5x5x128x128xbf16, #tpu.memory_space<vmem>>, vector<1x1x128x128xbf16>
    %262 = vector.shape_cast %261 : vector<1x1x128x128xbf16> to vector<128x128xbf16>
    %cst_241 = arith.constant dense<0.000000e+00> : vector<16x128xf32>
    %263 = tpu.matmul %260, %262, %cst_241 {dimension_numbers = #tpu.dot_dimension_numbers<[1], [0], [0], [1], [0, 0, 1, 1], [], []>} : vector<16x128xbf16>, vector<128x128xbf16>, vector<16x128xf32> -> vector<16x128xf32>
    %264 = arith.addf %259, %263 : vector<16x128xf32>
    %c4_242 = arith.constant 4 : index
    %c0_243 = arith.constant 0 : index
    %c0_244 = arith.constant 0 : index
    %265 = vector.load %arg3[%c4_242, %c0_243, %c0_244] : memref<5x1x128xf32, #tpu.memory_space<vmem>>, vector<1x1x128xf32>
    %266 = vector.shape_cast %265 : vector<1x1x128xf32> to vector<1x128xf32>
    %267 = vector.broadcast %266 : vector<1x128xf32> to vector<16x128xf32>
    %268 = arith.addf %264, %267 : vector<16x128xf32>
    %cst_245 = arith.constant 0.000000e+00 : f32
    %269 = vector.broadcast %cst_245 : f32 to vector<16x128xf32>
    %270 = arith.maximumf %268, %269 : vector<16x128xf32>
    %cst_246 = arith.constant dense<0.000000e+00> : vector<16xf32>
    %271 = vector.multi_reduction <add>, %270, %cst_246 [1] : vector<16x128xf32> to vector<16xf32>
    %272 = vector.shape_cast %271 : vector<16xf32> to vector<16x1xf32>
    %cst_247 = arith.constant 3.125000e-02 : f32
    %273 = vector.broadcast %cst_247 : f32 to vector<16x1xf32>
    %274 = arith.mulf %272, %273 : vector<16x1xf32>
    %275 = arith.mulf %270, %270 : vector<16x128xf32>
    %cst_248 = arith.constant dense<0.000000e+00> : vector<16xf32>
    %276 = vector.multi_reduction <add>, %275, %cst_248 [1] : vector<16x128xf32> to vector<16xf32>
    %277 = vector.shape_cast %276 : vector<16xf32> to vector<16x1xf32>
    %cst_249 = arith.constant 3.125000e-02 : f32
    %278 = vector.broadcast %cst_249 : f32 to vector<16x1xf32>
    %279 = arith.mulf %277, %278 : vector<16x1xf32>
    %280 = arith.mulf %274, %274 : vector<16x1xf32>
    %281 = arith.subf %279, %280 : vector<16x1xf32>
    %282 = vector.broadcast %274 : vector<16x1xf32> to vector<16x128xf32>
    %283 = arith.subf %270, %282 : vector<16x128xf32>
    %cst_250 = arith.constant 9.99999974E-6 : f32
    %284 = vector.broadcast %cst_250 : f32 to vector<16x1xf32>
    %285 = arith.addf %281, %284 : vector<16x1xf32>
    %286 = math.rsqrt %285 : vector<16x1xf32>
    %287 = vector.broadcast %286 : vector<16x1xf32> to vector<16x128xf32>
    %288 = arith.mulf %283, %287 : vector<16x128xf32>
    %c4_251 = arith.constant 4 : index
    %c0_252 = arith.constant 0 : index
    %c0_253 = arith.constant 0 : index
    %289 = vector.load %arg4[%c4_251, %c0_252, %c0_253] : memref<5x1x128xf32, #tpu.memory_space<vmem>>, vector<1x1x128xf32>
    %290 = vector.shape_cast %289 : vector<1x1x128xf32> to vector<1x128xf32>
    %291 = vector.broadcast %290 : vector<1x128xf32> to vector<16x128xf32>
    %292 = arith.mulf %288, %291 : vector<16x128xf32>
    %c4_254 = arith.constant 4 : index
    %c0_255 = arith.constant 0 : index
    %c0_256 = arith.constant 0 : index
    %293 = vector.load %arg5[%c4_254, %c0_255, %c0_256] : memref<5x1x128xf32, #tpu.memory_space<vmem>>, vector<1x1x128xf32>
    %294 = vector.shape_cast %293 : vector<1x1x128xf32> to vector<1x128xf32>
    %295 = vector.broadcast %294 : vector<1x128xf32> to vector<16x128xf32>
    %296 = arith.addf %292, %295 : vector<16x128xf32>
    %297 = arith.truncf %296 : vector<16x128xf32> to vector<16x128xbf16>
    %c8_257 = arith.constant 8 : index
    %c0_258 = arith.constant 0 : index
    %298 = vector.load %arg9[%c8_257, %c0_258] : memref<32x128xbf16, #tpu.memory_space<vmem>>, vector<16x128xbf16>
    tpu.vector_store %arg9[%c8_257, %c0_258], %297 {strides = array<i32>} : memref<32x128xbf16, #tpu.memory_space<vmem>>, vector<16x128xbf16>,
    %c8_259 = arith.constant 8 : index
    %c0_260 = arith.constant 0 : index
    %299 = vector.load %arg9[%c8_259, %c0_260] : memref<32x128xbf16, #tpu.memory_space<vmem>>, vector<16x128xbf16>
    %c0_261 = arith.constant 0 : index
    %c0_262 = arith.constant 0 : index
    %300 = vector.load %arg6[%c0_261, %c0_262] : memref<128x2xbf16, #tpu.memory_space<vmem>>, vector<128x2xbf16>
    %cst_263 = arith.constant dense<0.000000e+00> : vector<16x2xf32>
    %301 = tpu.matmul %299, %300, %cst_263 {dimension_numbers = #tpu.dot_dimension_numbers<[1], [0], [0], [1], [0, 0, 1, 1], [], []>} : vector<16x128xbf16>, vector<128x2xbf16>, vector<16x2xf32> -> vector<16x2xf32>
    %c0_264 = arith.constant 0 : index
    %c0_265 = arith.constant 0 : index
    %302 = vector.load %arg7[%c0_264, %c0_265] : memref<1x2xf32, #tpu.memory_space<vmem>>, vector<1x2xf32>
    %303 = vector.broadcast %302 : vector<1x2xf32> to vector<16x2xf32>
    %304 = arith.addf %301, %303 : vector<16x2xf32>
    %c0_266 = arith.constant 0 : index
    %c0_267 = arith.constant 0 : index
    %c0_268 = arith.constant 0 : index
    %305 = vector.load %arg8[%c0_266, %c0_267, %c0_268] : memref<1x16x2xf32, #tpu.memory_space<vmem>>, vector<1x16x2xf32>
    %306 = vector.shape_cast %305 : vector<1x16x2xf32> to vector<16x2xf32>
    %307 = vector.shape_cast %304 : vector<16x2xf32> to vector<1x16x2xf32>
    tpu.vector_store %arg8[%c0_266, %c0_267, %c0_268], %307 {strides = array<i32>} : memref<1x16x2xf32, #tpu.memory_space<vmem>>, vector<1x16x2xf32>,
    return
  }
  func.func @transform_0(%arg0: i32) -> (i32, i32, i32) {
    %c0_i32 = arith.constant 0 : i32
    %c0_i32_0 = arith.constant 0 : i32
    %c0_i32_1 = arith.constant 0 : i32
    return %arg0, %c0_i32, %c0_i32_0 : i32, i32, i32
  }
  func.func @transform_1(%arg0: i32) -> (i32, i32, i32, i32) {
    %c0_i32 = arith.constant 0 : i32
    %c0_i32_0 = arith.constant 0 : i32
    %c0_i32_1 = arith.constant 0 : i32
    %c0_i32_2 = arith.constant 0 : i32
    %c0_i32_3 = arith.constant 0 : i32
    return %c0_i32, %c0_i32_0, %c0_i32_1, %c0_i32_2 : i32, i32, i32, i32
  }
  func.func @transform_2(%arg0: i32) -> (i32, i32, i32) {
    %c0_i32 = arith.constant 0 : i32
    %c0_i32_0 = arith.constant 0 : i32
    %c0_i32_1 = arith.constant 0 : i32
    %c0_i32_2 = arith.constant 0 : i32
    return %c0_i32, %c0_i32_0, %c0_i32_1 : i32, i32, i32
  }
  func.func @transform_3(%arg0: i32) -> (i32, i32, i32) {
    %c0_i32 = arith.constant 0 : i32
    %c0_i32_0 = arith.constant 0 : i32
    %c0_i32_1 = arith.constant 0 : i32
    %c0_i32_2 = arith.constant 0 : i32
    return %c0_i32, %c0_i32_0, %c0_i32_1 : i32, i32, i32
  }
  func.func @transform_4(%arg0: i32) -> (i32, i32, i32) {
    %c0_i32 = arith.constant 0 : i32
    %c0_i32_0 = arith.constant 0 : i32
    %c0_i32_1 = arith.constant 0 : i32
    %c0_i32_2 = arith.constant 0 : i32
    return %c0_i32, %c0_i32_0, %c0_i32_1 : i32, i32, i32
  }
  func.func @transform_5(%arg0: i32) -> (i32, i32) {
    %c0_i32 = arith.constant 0 : i32
    %c0_i32_0 = arith.constant 0 : i32
    %c0_i32_1 = arith.constant 0 : i32
    return %c0_i32, %c0_i32_0 : i32, i32
  }
  func.func @transform_6(%arg0: i32) -> (i32, i32) {
    %c0_i32 = arith.constant 0 : i32
    %c0_i32_0 = arith.constant 0 : i32
    %c0_i32_1 = arith.constant 0 : i32
    return %c0_i32, %c0_i32_0 : i32, i32
  }
  func.func @transform_7(%arg0: i32) -> (i32, i32, i32) {
    %c0_i32 = arith.constant 0 : i32
    %c0_i32_0 = arith.constant 0 : i32
    %c0_i32_1 = arith.constant 0 : i32
    return %arg0, %c0_i32, %c0_i32_0 : i32, i32, i32
  }
}

</mosaic_0001>

<bundles_post_ra>
// kernel: pitch_predictor_forward.1
= control target key start
LH: loop header
LB: loop body
LE: loop exit
PB: predicated region body
PF: predicated region fallthrough
CT: control target
= control target key end

     0   :  { %s5622_s24 = smov 0   ;;  %s6713_s0 = inlined_call_operand.vmem [shape: f32[2,16,8], index: 0, kind: input, shape index: {}]   ;;  %s6714_s1 = inlined_call_operand.vmem [shape: bf16[5,5,128,128], index: 1, kind: input, shape index: {}]   ;;  %s6715_s2 = inlined_call_operand.vmem [shape: f32[5,1,128], index: 2, kind: input, shape index: {}]   ;;  %s6716_s3 = inlined_call_operand.vmem [shape: f32[5,1,128], index: 3, kind: input, shape index: {}]   ;;  %s6717_s4 = inlined_call_operand.vmem [shape: f32[5,1,128], index: 4, kind: input, shape index: {}]   ;;  %s6718_s5 = inlined_call_operand.vmem [shape: bf16[128,2], index: 5, kind: input, shape index: {}]   ;;  %s6719_s6 = inlined_call_operand.vmem [shape: f32[1,2], index: 6, kind: input, shape index: {}]   ;;  %s6720_s7 = inlined_call_operand.vmem [shape: f32[2,16,2], index: 7, kind: output, shape index: {}]  }
   0x1 LB: > { %s3850_s25 = sadd.s32 4294967295, %s5577_s24   ;;  %p3854_p0 = scmp.ge.s32.totalorder %s5577_s24, 1  ;;  %s5577_s24 = sphi %s5622_s24, %s17_s24  }
   0x2   : > { %p237_p1 = scmp.lt.s32.totalorder %s5577_s24, 3 }
   0x4   : > { %p238_p2 = pnand %p3854_p0, %p237_p1 }
   0x5   : > { %p269_p3 = scmp.lt.s32.totalorder (!%p238_p2), %s3850_s25, 1 }
   0x6   : > { %241 = sbr.rel (%p238_p2) target bundleno = 2507 (0x9cb), region = 48 }
   0xb   : > { %v5308_v0 = vld [vmem:[%s6714_s1 + $0x78] sm:$0xff]   ;;  %v5579_v1 = vmov 0.0   ;;  %v5310_v3 = vld [vmem:[%s6714_s1 + $0x70] sm:$0xff]   ;;  %vm5580_vm0 = vmmov 0   ;;  %v5581_v5 = vmov 0   ;;  %v5312_v6 = vld [vmem:[%s6714_s1 + $0x68] sm:$0xff]  }
   0xc   : > { %4777 = vmatprep.subr.bf16.mxu0 %v5579_v1  ;;  %4797 = vmatprep.subr.bf16.mxu1 %v5579_v1  ;;  %v5309_v2 = vld [vmem:[%s6714_s1 + $0x38] sm:$0xff]   ;;  %v5311_v4 = vld [vmem:[%s6714_s1 + $0x30] sm:$0xff]   ;;  %280 = vst [vmem:[#allocation2] sm:$0xf] %v5581_v5  ;;  %281 = vst [vmem:[#allocation2 + $0xc] sm:$0xf] %v5581_v5 }
   0xd   : > { %4778 = vmatpush3.bf16.msra.mxu0 %v5308_v0  ;;  %4793 = vmatprep.mubr.msk.bf16.mxu0 %vm5580_vm0, %v5579_v1  ;;  %s6722_s25 = smov (!%p269_p3, %s3850_s25), 1  ;;  %v5313_v7 = vld [vmem:[%s6714_s1 + $0x28] sm:$0xff]   ;;  %v5314_v8 = vld [vmem:[%s6714_s1 + $0x60] sm:$0xff]   ;;  %v5316_v10 = vld [vmem:[%s6714_s1 + $0x58] sm:$0xff]   ;;  %vm284_vm1 = vcmask 64512   ;;  %vm453_vm2 = vcmask 1044480  }
   0xe   : > { %4798 = vmatpush3.bf16.msra.mxu1 %v5309_v2  ;;  %4779 = vmatprep.subr.bf16.mxu0 %v5579_v1  ;;  %s4529_s17 = sshll.u32 %s6722_s25, 4  ;;  %v5315_v9 = vld [vmem:[%s6714_s1 + $0x20] sm:$0xff]   ;;  %v5317_v11 = vld [vmem:[%s6714_s1 + $0x18] sm:$0xff]   ;;  %v5318_v16 = vld [vmem:[%s6714_s1 + $0x50] sm:$0xff]   ;;  %vm342_vm3 = vsmask.f32 4352 }
   0xf   : > { %4799 = vmatprep.subr.bf16.mxu1 %v5579_v1  ;;  %4813 = vmatprep.mubr.msk.bf16.mxu1 %vm5580_vm0, %v5579_v1  ;;  %s273_s22 = scalar_lea.vmem %s6713_s0, %s4529_s17  ;;  %v5319_v19 = vld [vmem:[%s6714_s1 + $0x10] sm:$0xff]   ;;  %v5320_v20 = vld [vmem:[%s6714_s1 + $0x48] sm:$0xff]   ;;  %v5322_v22 = vld [vmem:[%s6714_s1 + $0x40] sm:$0xff]   ;;  %vm685_vm4 = vsmask.f32 7424  ;;  %vm811_vm5 = vcmask 1046528   ;;  %s278_s16 = scalar_lea.vmem %s6720_s7, %s4529_s17 }
  0x10   : > { %v282_v12 = vld [vmem:[%s273_s22] sm:$0xff]  ;;  %v283_v13 = vld [vmem:[%s273_s22 + $0x8] sm:$0xff]  ;;  %v5328_v36 = vld [vmem:[%s6714_s1 + $0xf8] sm:$0xff]   ;;  %vm3792_vm6 = vcmask 15360  }
  0x11   : > { %4780 = vmatpush3.bf16.msra.mxu0 %v5310_v3  ;;  %v285_v14 = vsel %vm284_vm1, %v282_v12, 0.0  ;;  %v286_v15 = vsel %vm284_vm1, %v283_v13, 0.0  ;;  %v5321_v21 = vld [vmem:[%s6714_s1 + $0x8] sm:$0xff]   ;;  %v5323_v24 = vld [vmem:[%s6714_s1] sm:$0xff]   ;;  %v5327_v44 = vld [vmem:[%s6714_s1 + $0xb8] sm:$0xff]  }
  0x12   : > { %4800 = vmatpush3.bf16.msra.mxu1 %v5311_v4  ;;  %4781 = vmatprep.subr.bf16.mxu0 %v5579_v1  ;;  %v4531_v17 = vpack.c.bf16 %v285_v14, %v285_v14  ;;  %v4532_v18 = vpack.c.bf16 %v286_v15, %v286_v15  ;;  %v5330_v45 = vld [vmem:[%s6714_s1 + $0xf0] sm:$0xff]   ;;  %v5332_v50 = vld [vmem:[%s6714_s1 + $0xe8] sm:$0xff]   ;;  %v5334_v55 = vld [vmem:[%s6714_s1 + $0xe0] sm:$0xff]  }
  0x13   : > { %4801 = vmatprep.subr.bf16.mxu1 %v5579_v1  ;;  %v297_v23 = vld [vmem:[#allocation2] sm:$0x8]  ;;  %v5329_v49 = vld [vmem:[%s6714_s1 + $0xb0] sm:$0xff]   ;;  %v5739_v52 = vld [vmem:[#allocation2 + $0xc] ss:$0 sps:$4 sm:$0x11]  }
  0x14   : > { %295 = vst [vmem:[#allocation2 + $0x4] sm:$0xf] %v4531_v17  ;;  %296 = vst [vmem:[#allocation2 + $0x8] sm:$0xf] %v4532_v18  ;;  %v5331_v53 = vld [vmem:[%s6714_s1 + $0xa8] sm:$0xff]   ;;  %v5333_v56 = vld [vmem:[%s6714_s1 + $0xa0] sm:$0xff]  }
  0x15   : > { %4782 = vmatpush3.bf16.msra.mxu0 %v5312_v6  ;;  %v5336_v57 = vld [vmem:[%s6714_s1 + $0xd8] sm:$0xff]   ;;  %v694_v59 = vshll.u32 %v5739_v52, 16  ;;  %v813_v62 = vrot.slane %v5739_v52, 1  ;;  %v5338_v2 = vld [vmem:[%s6714_s1 + $0xd0] sm:$0xff]   ;;  %v5340_v6 = vld [vmem:[%s6714_s1 + $0xc8] sm:$0xff]  }
  0x16   : > { %4802 = vmatpush3.bf16.msra.mxu1 %v5313_v7  ;;  %4783 = vmatprep.subr.bf16.mxu0 %v5579_v1  ;;  %v5335_v0 = vld [vmem:[%s6714_s1 + $0x98] sm:$0xff]   ;;  %v5337_v5 = vld [vmem:[%s6714_s1 + $0x90] sm:$0xff]   ;;  %v5339_v7 = vld [vmem:[%s6714_s1 + $0x88] sm:$0xff]  }
  0x17   : > { %4803 = vmatprep.subr.bf16.mxu1 %v5579_v1  ;;  %v696_v3 = vrot.slane %v694_v59, 1  ;;  %v5343_v12 = vld [vmem:[%s6714_s1 + $0x138] sm:$0xff]   ;;  %v5346_v14 = vld [vmem:[%s6714_s1 + $0x130] sm:$0xff]   ;;  %v5347_v15 = vld [vmem:[%s6714_s1 + $0x128] sm:$0xff]  }
  0x18   : > { %v5349_v17 = vld [vmem:[%s6714_s1 + $0x118] sm:$0xff]   ;;  %v5350_v18 = vld [vmem:[%s6714_s1 + $0x110] sm:$0xff]  }
  0x19   : > { %4784 = vmatpush3.bf16.msra.mxu0 %v5314_v8  ;;  %v5342_v8 = vld [vmem:[%s6714_s1 + $0xc0] sm:$0xff]   ;;  %v5355_v59 = vld [vmem:[%s6714_s1 + $0x1b8] sm:$0xff]  }
  0x1a   : > { %4804 = vmatpush3.bf16.msra.mxu1 %v5315_v9  ;;  %4785 = vmatprep.subr.bf16.mxu0 %v5579_v1 }
  0x1b   : > { %4805 = vmatprep.subr.bf16.mxu1 %v5579_v1  ;;  %v5705_v25 = vld [vmem:[#allocation2 + $0x4] sm:$0xf]  ;;  %v5707_v26 = vld [vmem:[#allocation2 + $0x8] sm:$0xf] }
  0x1c   : > { %v3877_v27 = vcombine.low %v297_v23, %v5705_v25  ;;  %v3878_v28 = vcombine.low %v5707_v26, %v5707_v26  ;;  %v5326_v29 = vld [vmem:[#allocation2 + $0x8] ss:$0 sps:$4 sm:$0x77]   ;;  %v657_v47 = vld [vmem:[#allocation2 + $0x4] sm:$0xf]  ;;  %v3912_v13 = vcombine.low %v5705_v25, %v5707_v26 }
  0x1d   : > { %4786 = vmatpush3.bf16.msra.mxu0 %v5316_v10  ;;  %v455_v35 = vrot.slane %v5326_v29, 3  ;;  %v658_v48 = vld [vmem:[#allocation2 + $0x8] sm:$0xf]  ;;  %v790_v61 = vld [vmem:[#allocation2 + $0x4] sm:$0xe] }
  0x1e   : > { %4806 = vmatpush3.bf16.msra.mxu1 %v5317_v11  ;;  %4787 = vmatprep.subr.bf16.mxu0 %v5579_v1  ;;  %v344_v30 = vshrl.u32 %v3877_v27, 16  ;;  %v347_v31 = vshll.u32 %v3877_v27, 16  ;;  %v352_v32 = vshrl.u32 %v3878_v28, 16  ;;  %v355_v33 = vshll.u32 %v3878_v28, 16  ;;  %v5341_v10 = vld [vmem:[%s6714_s1 + $0x80] sm:$0xff]  }
  0x1f   : > { %4807 = vmatprep.subr.bf16.mxu1 %v5579_v1  ;;  %v454_v34 = vrot.slane %v3877_v27, 3  ;;  %v3937_v51 = vcombine.low %v657_v47, %v658_v48  ;;  %v3963_v63 = vcombine.low %v790_v61, %v658_v48  ;;  %v5357_v61 = vld [vmem:[%s6714_s1 + $0x1b0] sm:$0xff]  }
  0x20   : > { %v346_v37 = vrot.slane %v344_v30, 3  ;;  %v349_v38 = vrot.slane %v347_v31, 4  ;;  %v354_v39 = vrot.slane %v352_v32, 3  ;;  %v357_v40 = vrot.slane %v355_v33, 4 }
  0x21   : > { %4788 = vmatpush3.bf16.msra.mxu0 %v5318_v16  ;;  %v456_v41 = vsel %vm453_vm2, %v454_v34, %v455_v35  ;;  %v689_v54 = vshll.u32 %v3937_v51, 16  ;;  %v687_v58 = vshrl.u32 %v3937_v51, 16  ;;  %v812_v4 = vrot.slane %v3963_v63, 1  ;;  %v5348_v16 = vld [vmem:[%s6714_s1 + $0x120] sm:$0xff]   ;;  %v5359_v63 = vld [vmem:[%s6714_s1 + $0x1a8] sm:$0xff]  }
  0x22   : > { %4808 = vmatpush3.bf16.msra.mxu1 %v5319_v19  ;;  %4789 = vmatprep.subr.bf16.mxu0 %v5579_v1  ;;  %v350_v42 = vor.u32 %v349_v38, %v346_v37  ;;  %v358_v43 = vor.u32 %v357_v40, %v354_v39  ;;  %v5351_v19 = vld [vmem:[%s6714_s1 + $0x108] sm:$0xff]  }
  0x23   : > { %4809 = vmatprep.subr.bf16.mxu1 %v5579_v1  ;;  %v691_v60 = vrot.slane %v689_v54, 1 }
  0x24   : > { %v359_v46 = vsel %vm342_vm3, %v350_v42, %v358_v43 }
  0x25   : > { %4790 = vmatpush3.bf16.msra.mxu0 %v5320_v20  ;;  %v692_v9 = vor.u32 %v691_v60, %v687_v58  ;;  %v5352_v20 = vld [vmem:[%s6714_s1 + $0x100] sm:$0xff]   ;;  %v5356_v58 = vld [vmem:[%s6714_s1 + $0x170] sm:$0xff]   ;;  %v5358_v60 = vld [vmem:[%s6714_s1 + $0x168] sm:$0xff]  }
  0x26   : > { %4810 = vmatpush3.bf16.msra.mxu1 %v5321_v21  ;;  %4791 = vmatprep.subr.bf16.mxu0 %v5579_v1  ;;  %v814_v21 = vsel %vm811_vm5, %v812_v4, %v813_v62  ;;  %v5360_v62 = vld [vmem:[%s6714_s1 + $0x160] sm:$0xff]   ;;  %v5363_v4 = vld [vmem:[%s6714_s1 + $0x198] sm:$0xff]  }
  0x27   : > { %4811 = vmatprep.subr.bf16.mxu1 %v5579_v1  ;;  %v697_v11 = vsel %vm685_vm4, %v692_v9, %v696_v3  ;;  %v5364_v3 = vld [vmem:[%s6714_s1 + $0x150] sm:$0xff]   ;;  %v5369_v9 = vld [vmem:[%s6714_s1 + $0x180] sm:$0xff]  }
  0x29   : > { %4792 = vmatpush3.bf16.msra.mxu0 %v5322_v22 }
  0x2a   : > { %4812 = vmatpush3.bf16.msra.mxu1 %v5323_v24  ;;  %4817 = vmatprep.subr.bf16.mxu0 %v5579_v1 }
  0x2b   : > { %4837 = vmatprep.subr.bf16.mxu1 %v5579_v1 }
  0x2c   : > { %4794 = vmatmul.mubr.bf16.vlgmr.msra.gmra.mxu0 %v359_v46 }
  0x2d   : > { %4814 = vmatmul.mubr.bf16.vlgmr.msra.gmra.mxu1 %v456_v41  ;;  %4818 = vmatpush3.bf16.msra.mxu0 %v5327_v44  ;;  %v3972_v44 = vld [vmem:[%s6715_s2] ss:$0 sm:$0xff] }
  0x2e   : > { %4838 = vmatpush3.bf16.msra.mxu1 %v5328_v36  ;;  %4853 = vmatprep.mubr.msk.bf16.mxu1 %vm5580_vm0, %v5579_v1 }
  0x2f   : > { %4839 = vmatprep.subr.bf16.mxu1 %v5579_v1  ;;  %4833 = vmatprep.mubr.msk.bf16.mxu0 %vm5580_vm0, %v5579_v1 }
  0x30   : > { %4819 = vmatprep.subr.bf16.mxu0 %v5579_v1 }
  0x31   : > { %4820 = vmatpush3.bf16.msra.mxu0 %v5329_v49 }
  0x32   : > { %4840 = vmatpush3.bf16.msra.mxu1 %v5330_v45  ;;  %4821 = vmatprep.subr.bf16.mxu0 %v5579_v1 }
  0x33   : > { %4841 = vmatprep.subr.bf16.mxu1 %v5579_v1 }
  0x35   : > { %4822 = vmatpush3.bf16.msra.mxu0 %v5331_v53 }
  0x36   : > { %4842 = vmatpush3.bf16.msra.mxu1 %v5332_v50  ;;  %4823 = vmatprep.subr.bf16.mxu0 %v5579_v1 }
  0x37   : > { %4843 = vmatprep.subr.bf16.mxu1 %v5579_v1 }
  0x39   : > { %4824 = vmatpush3.bf16.msra.mxu0 %v5333_v56 }
  0x3a   : > { %4844 = vmatpush3.bf16.msra.mxu1 %v5334_v55  ;;  %4825 = vmatprep.subr.bf16.mxu0 %v5579_v1 }
  0x3b   : > { %4845 = vmatprep.subr.bf16.mxu1 %v5579_v1 }
  0x3d   : > { %4826 = vmatpush3.bf16.msra.mxu0 %v5335_v0  ;;  %v5362_v0 = vld [vmem:[%s6714_s1 + $0x158] sm:$0xff]  }
  0x3e   : > { %4846 = vmatpush3.bf16.msra.mxu1 %v5336_v57  ;;  %4827 = vmatprep.subr.bf16.mxu0 %v5579_v1  ;;  %v5354_v57 = vld [vmem:[%s6714_s1 + $0x178] sm:$0xff]  }
  0x3f   : > { %4847 = vmatprep.subr.bf16.mxu1 %v5579_v1 }
  0x41   : > { %4828 = vmatpush3.bf16.msra.mxu0 %v5337_v5  ;;  %v5366_v5 = vld [vmem:[%s6714_s1 + $0x148] sm:$0xff]  }
  0x42   : > { %4848 = vmatpush3.bf16.msra.mxu1 %v5338_v2  ;;  %4829 = vmatprep.subr.bf16.mxu0 %v5579_v1  ;;  %v5361_v2 = vld [vmem:[%s6714_s1 + $0x1a0] sm:$0xff]  }
  0x43   : > { %4849 = vmatprep.subr.bf16.mxu1 %v5579_v1 }
  0x45   : > { %4830 = vmatpush3.bf16.msra.mxu0 %v5339_v7  ;;  %v5368_v7 = vld [vmem:[%s6714_s1 + $0x140] sm:$0xff]  }
  0x46   : > { %4850 = vmatpush3.bf16.msra.mxu1 %v5340_v6  ;;  %4831 = vmatprep.subr.bf16.mxu0 %v5579_v1  ;;  %v5365_v6 = vld [vmem:[%s6714_s1 + $0x190] sm:$0xff]  }
  0x47   : > { %4851 = vmatprep.subr.bf16.mxu1 %v5579_v1 }
  0x49   : > { %4832 = vmatpush3.bf16.msra.mxu0 %v5341_v10 }
  0x4a   : > { %4852 = vmatpush3.bf16.msra.mxu1 %v5342_v8  ;;  %4857 = vmatprep.subr.bf16.mxu0 %v5579_v1  ;;  %v5367_v8 = vld [vmem:[%s6714_s1 + $0x188] sm:$0xff]  }
  0x4b   : > { %4877 = vmatprep.subr.bf16.mxu1 %v5579_v1 }
  0x4c   : > { %4834 = vmatmul.mubr.bf16.vlgmr.msra.gmra.mxu0 %v3912_v13 }
  0x4d   : > { %4854 = vmatmul.mubr.bf16.vlgmr.msra.gmra.mxu1 %v697_v11  ;;  %4858 = vmatpush3.bf16.msra.mxu0 %v5343_v12 }
  0x4e   : > { %4893 = vmatprep.mubr.msk.bf16.mxu1 %vm5580_vm0, %v5579_v1  ;;  %4873 = vmatprep.mubr.msk.bf16.mxu0 %vm5580_vm0, %v5579_v1 }
  0x4f   : > { %4859 = vmatprep.subr.bf16.mxu0 %v5579_v1  ;;  %4878 = vmatpush3.bf16.msra.mxu1 %v5355_v59  ;;  %v5374_v59 = vld [vmem:[%s6714_s1 + $0x1f8] sm:$0xff]  }
  0x50   : > { %4879 = vmatprep.subr.bf16.mxu1 %v5579_v1 }
  0x51   : > { %4860 = vmatpush3.bf16.msra.mxu0 %v5346_v14 }
  0x52   : > { %4861 = vmatprep.subr.bf16.mxu0 %v5579_v1 }
  0x53   : > { %4880 = vmatpush3.bf16.msra.mxu1 %v5357_v61  ;;  %v5377_v61 = vld [vmem:[%s6714_s1 + $0x228] sm:$0xff]  }
  0x54   : > { %4881 = vmatprep.subr.bf16.mxu1 %v5579_v1 }
  0x55   : > { %4862 = vmatpush3.bf16.msra.mxu0 %v5347_v15 }
  0x56   : > { %4863 = vmatprep.subr.bf16.mxu0 %v5579_v1 }
  0x57   : > { %4882 = vmatpush3.bf16.msra.mxu1 %v5359_v63  ;;  %v5379_v63 = vld [vmem:[%s6714_s1 + $0x220] sm:$0xff]  }
  0x58   : > { %4883 = vmatprep.subr.bf16.mxu1 %v5579_v1 }
  0x59   : > { %4864 = vmatpush3.bf16.msra.mxu0 %v5348_v16 }
  0x5a   : > { %4865 = vmatprep.subr.bf16.mxu0 %v5579_v1 }
  0x5b   : > { %4884 = vmatpush3.bf16.msra.mxu1 %v5361_v2 }
  0x5c   : > { %4885 = vmatprep.subr.bf16.mxu1 %v5579_v1 }
  0x5d   : > { %4866 = vmatpush3.bf16.msra.mxu0 %v5349_v17 }
  0x5e   : > { %4867 = vmatprep.subr.bf16.mxu0 %v5579_v1 }
  0x5f   : > { %4886 = vmatpush3.bf16.msra.mxu1 %v5363_v4 }
  0x60   : > { %4887 = vmatprep.subr.bf16.mxu1 %v5579_v1 }
  0x61   : > { %4868 = vmatpush3.bf16.msra.mxu0 %v5350_v18 }
  0x62   : > { %4869 = vmatprep.subr.bf16.mxu0 %v5579_v1 }
  0x63   : > { %4888 = vmatpush3.bf16.msra.mxu1 %v5365_v6 }
  0x64   : > { %4889 = vmatprep.subr.bf16.mxu1 %v5579_v1 }
  0x65   : > { %4870 = vmatpush3.bf16.msra.mxu0 %v5351_v19 }
  0x66   : > { %4871 = vmatprep.subr.bf16.mxu0 %v5579_v1 }
  0x67   : > { %4890 = vmatpush3.bf16.msra.mxu1 %v5367_v8  ;;  %v5382_v8 = vld [vmem:[%s6714_s1 + $0x1d8] sm:$0xff]  }
  0x68   : > { %4891 = vmatprep.subr.bf16.mxu1 %v5579_v1 }
  0x69   : > { %4872 = vmatpush3.bf16.msra.mxu0 %v5352_v20 }
  0x6a   : > { %4897 = vmatprep.subr.bf16.mxu0 %v5579_v1 }
  0x6b   : > { %4892 = vmatpush3.bf16.msra.mxu1 %v5369_v9 }
  0x6c   : > { %4874 = vmatmul.mubr.bf16.vlgmr.msra.gmra.mxu0 %v814_v21  ;;  %4917 = vmatprep.subr.bf16.mxu1 %v5579_v1 }
  0x6d   : > { %4913 = vmatprep.mubr.msk.bf16.mxu0 %vm5580_vm0, %v5579_v1  ;;  %4898 = vmatpush3.bf16.msra.mxu0 %v5354_v57 }
  0x6e   : > { %4899 = vmatprep.subr.bf16.mxu0 %v5579_v1 }
  0x71   : > { %4900 = vmatpush3.bf16.msra.mxu0 %v5356_v58 }
  0x72   : > { %4901 = vmatprep.subr.bf16.mxu0 %v5579_v1 }
  0x75   : > { %4902 = vmatpush3.bf16.msra.mxu0 %v5358_v60 }
  0x76   : > { %4903 = vmatprep.subr.bf16.mxu0 %v5579_v1 }
  0x79   : > { %4904 = vmatpush3.bf16.msra.mxu0 %v5360_v62  ;;  %v5376_v62 = vld [vmem:[%s6714_s1 + $0x1f0] sm:$0xff]  }
  0x7a   : > { %4905 = vmatprep.subr.bf16.mxu0 %v5579_v1 }
  0x7d   : > { %4906 = vmatpush3.bf16.msra.mxu0 %v5362_v0  ;;  %v5378_v0 = vld [vmem:[%s6714_s1 + $0x1e8] sm:$0xff]  }
  0x7e   : > { %4907 = vmatprep.subr.bf16.mxu0 %v5579_v1 }
  0x81   : > { %4908 = vmatpush3.bf16.msra.mxu0 %v5364_v3  ;;  %v5381_v3 = vld [vmem:[%s6714_s1 + $0x218] sm:$0xff]  }
  0x82   : > { %4909 = vmatprep.subr.bf16.mxu0 %v5579_v1 }
  0x85   : > { %4910 = vmatpush3.bf16.msra.mxu0 %v5366_v5  ;;  %v5380_v5 = vld [vmem:[%s6714_s1 + $0x1e0] sm:$0xff]  }
  0x86   : > { %4911 = vmatprep.subr.bf16.mxu0 %v5579_v1 }
  0x89   : > { %4912 = vmatpush3.bf16.msra.mxu0 %v5368_v7  ;;  %v5383_v7 = vld [vmem:[%s6714_s1 + $0x210] sm:$0xff]  }
  0x8a   : > { %4937 = vmatprep.subr.bf16.mxu0 %v5579_v1 }
  0xec   : > { %v443_v24 = vpop.f32.mrf.mxu0 }
  0xed   : > { %v540_v22 = vpop.f32.mrf.mxu1 }
  0xee   : > { %v4795_v26 = vpop.f32.mrf.mxu0  ;;  %v541_v38 = vadd.f32 %v540_v22, %v443_v24 }
  0xef   : > { %v4815_v23 = vpop.f32.mrf.mxu1  ;;  %v3973_v26 = vld [vmem:[%s6716_s3] ss:$0 sm:$0xff] }
  0xf0   : > { %v446_v28 = vpop.f32.mrf.mxu0 }
  0xf1   : > { %v543_v25 = vpop.f32.mrf.mxu1 }
  0xf2   : > { %v4796_v29 = vpop.f32.mrf.mxu0  ;;  %v544_v40 = vadd.f32 %v543_v25, %v446_v28  ;;  %v3974_v28 = vld [vmem:[%s6717_s4] ss:$0 sm:$0xff] }
  0xf3   : > { %v4816_v27 = vpop.f32.mrf.mxu1 }
 0x10c   : > { %v648_v32 = vpop.f32.mrf.mxu0 }
 0x10d   : > { %v781_v30 = vpop.f32.mrf.mxu1  ;;  %v655_v39 = vadd.f32 %v648_v32, %v541_v38  ;;  %v972_v38 = vld [vmem:[#allocation2] sm:$0x8] }
 0x10e   : > { %v4835_v34 = vpop.f32.mrf.mxu0 }
 0x10f   : > { %v4855_v31 = vpop.f32.mrf.mxu1  ;;  %v788_v41 = vadd.f32 %v781_v30, %v655_v39 }
 0x110   : > { %v651_v36 = vpop.f32.mrf.mxu0 }
 0x111   : > { %v784_v33 = vpop.f32.mrf.mxu1  ;;  %v656_v42 = vadd.f32 %v651_v36, %v544_v40 }
 0x112   : > { %v4836_v37 = vpop.f32.mrf.mxu0 }
 0x113   : > { %v4856_v35 = vpop.f32.mrf.mxu1  ;;  %v789_v47 = vadd.f32 %v784_v33, %v656_v42 }
 0x12c   : > { %v898_v43 = vpop.f32.mrf.mxu0 }
 0x12d   : > { %v905_v45 = vadd.f32 %v898_v43, %v788_v41 }
 0x12e   : > { %v4875_v46 = vpop.f32.mrf.mxu0 }
 0x12f   : > { %v914_v48 = vadd.f32 %v3972_v44, %v905_v45 }
 0x130   : > { %v901_v49 = vpop.f32.mrf.mxu0 }
 0x131   : > { %v5836_v50 = vmax.f32 %v914_v48, 0.0  ;;  %v906_v51 = vadd.f32 %v901_v49, %v789_v47  ;;  %v5372_v47 = vld [vmem:[%s6714_s1 + $0x238] sm:$0xff]  }
 0x132   : > { %v4876_v52 = vpop.f32.mrf.mxu0 }
 0x133   : > { %v915_v53 = vadd.f32 %v3972_v44, %v906_v51  ;;  %918 = vadd.xlane.f32.xlu0 %v5836_v50  ;;  %v924_v54 = vmul.f32 %v5836_v50, %v5836_v50 }
 0x135   : > { %v5841_v55 = vmax.f32 %v915_v53, 0.0  ;;  %926 = vadd.xlane.f32.xlu1 %v924_v54 }
 0x137   : > { %920 = vadd.xlane.f32.xlu0 %v5841_v55  ;;  %v925_v56 = vmul.f32 %v5841_v55, %v5841_v55 }
 0x139   : > { %928 = vadd.xlane.f32.xlu1 %v925_v56  ;;  %v5375_v56 = vld [vmem:[%s6714_s1 + $0x230] sm:$0xff]  }
 0x1bc   : > { %v919_v10 = vpop.xlane.xlu0 %918 }
 0x1bd   : > { %v922_v11 = vmul.f32 0.03125, %v919_v10  ;;  %v5385_v10 = vld [vmem:[%s6714_s1 + $0x208] sm:$0xff]  }
 0x1be   : > { %v927_v12 = vpop.xlane.xlu1 %926 }
 0x1bf   : > { %v932_v13 = vmul.f32 %v922_v11, %v922_v11  ;;  %v930_v14 = vmul.f32 0.03125, %v927_v12  ;;  %v936_v24 = vsub.f32 %v5836_v50, %v922_v11  ;;  %v5389_v11 = vld [vmem:[#allocation2 + $0xc] ss:$0 sps:$4 sm:$0x11]   ;;  %v5384_v12 = vld [vmem:[%s6714_s1 + $0x1d0] sm:$0xff]  }
 0x1c0   : > { %v921_v15 = vpop.xlane.xlu0 %920 }
 0x1c1   : > { %v934_v16 = vsub.f32 %v930_v14, %v932_v13  ;;  %v923_v17 = vmul.f32 0.03125, %v921_v15  ;;  %v1367_v14 = vshll.u32 %v5389_v11, 16  ;;  %v5387_v15 = vld [vmem:[%s6714_s1 + $0x200] sm:$0xff]  }
 0x1c2   : > { %v929_v18 = vpop.xlane.xlu1 %928 }
 0x1c3   : > { %v938_v19 = vadd.f32 1e-05, %v934_v16  ;;  %v933_v20 = vmul.f32 %v923_v17, %v923_v17  ;;  %v931_v21 = vmul.f32 0.03125, %v929_v18  ;;  %v937_v30 = vsub.f32 %v5841_v55, %v923_v17  ;;  %v5386_v17 = vld [vmem:[%s6714_s1 + $0x1c8] sm:$0xff]  }
 0x1c5   : > { %5551 = vrsqrt.f32 %v938_v19  ;;  %v935_v22 = vsub.f32 %v931_v21, %v933_v20  ;;  %v1369_v19 = vrot.slane %v1367_v14, 1  ;;  %v5390_v21 = vld [vmem:[%s6714_s1 + $0x1c0] sm:$0xff]   ;;  %v5406_v14 = vld [vmem:[%s6714_s1 + $0x2e8] sm:$0xff]  }
 0x1c7   : > { %v939_v23 = vadd.f32 1e-05, %v935_v22  ;;  %v5392_v22 = vld [vmem:[%s6714_s1 + $0x278] sm:$0xff]  }
 0x1c9   : > { %5553 = vrsqrt.f32 %v939_v23 }
 0x1d2   : > { %v5552_v25 = vpop.eup %5551 }
 0x1d3   : > { %v942_v27 = vmul.f32 %v5552_v25, %v936_v24  ;;  %v5393_v24 = vld [vmem:[%s6714_s1 + $0x270] sm:$0xff]   ;;  %v5394_v25 = vld [vmem:[%s6714_s1 + $0x268] sm:$0xff]  }
 0x1d5   : > { %v951_v29 = vmul.f32 %v3973_v26, %v942_v27  ;;  %v5396_v27 = vld [vmem:[%s6714_s1 + $0x258] sm:$0xff]  }
 0x1d6   : > { %v5554_v31 = vpop.eup %5553 }
 0x1d7   : > { %v960_v32 = vadd.f32 %v3974_v28, %v951_v29  ;;  %v943_v33 = vmul.f32 %v5554_v31, %v937_v30  ;;  %v5398_v29 = vld [vmem:[%s6714_s1 + $0x248] sm:$0xff]  }
 0x1d9   : > { %v4533_v34 = vpack.c.bf16 %v960_v32, %v960_v32  ;;  %v952_v35 = vmul.f32 %v3973_v26, %v943_v33  ;;  %v5395_v26 = vld [vmem:[%s6714_s1 + $0x260] sm:$0xff]  }
 0x1da   : > { %v5399_v32 = vld [vmem:[%s6714_s1 + $0x240] sm:$0xff]  }
 0x1db   : > { %970 = vst [vmem:[#allocation2 + $0x4] sm:$0xf] %v4533_v34  ;;  %v961_v36 = vadd.f32 %v3974_v28, %v952_v35  ;;  %v5397_v28 = vld [vmem:[%s6714_s1 + $0x250] sm:$0xff]   ;;  %v1485_v34 = vrot.slane %v5389_v11, 1  ;;  %v5405_v11 = vld [vmem:[%s6714_s1 + $0x2a8] sm:$0xff]  }
 0x1dd   : > { %v4534_v37 = vpack.c.bf16 %v961_v36, %v961_v36 }
 0x1df   : > { %971 = vst [vmem:[#allocation2 + $0x8] sm:$0xf] %v4534_v37 }
 0x1e2   : > { %v5918_v39 = vld [vmem:[#allocation2 + $0x4] sm:$0xf] }
 0x1e3   : > { %v4009_v40 = vcombine.low %v972_v38, %v5918_v39  ;;  %v1331_v4 = vld [vmem:[#allocation2 + $0x4] sm:$0xf] }
 0x1e4   : > { %v1463_v30 = vld [vmem:[#allocation2 + $0x4] sm:$0xe] }
 0x1e5   : > { %v1019_v41 = vshrl.u32 %v4009_v40, 16  ;;  %v1022_v43 = vshll.u32 %v4009_v40, 16  ;;  %v1128_v45 = vrot.slane %v4009_v40, 3 }
 0x1e6   : > { %v5371_v42 = vld [vmem:[#allocation2 + $0x8] ss:$0 sps:$4 sm:$0x77]  }
 0x1e7   : > { %v5921_v44 = vld [vmem:[#allocation2 + $0x8] sm:$0xf]  ;;  %v1129_v46 = vrot.slane %v5371_v42, 3  ;;  %v1021_v49 = vrot.slane %v1019_v41, 3  ;;  %v1024_v51 = vrot.slane %v1022_v43, 4 }
 0x1e8   : > { %v4010_v48 = vcombine.low %v5921_v44, %v5921_v44  ;;  %v5957_v2 = vld [vmem:[#allocation2 + $0x8] sm:$0xf]  ;;  %v4044_v23 = vcombine.low %v5918_v39, %v5921_v44 }
 0x1e9   : > { %v1130_v50 = vsel %vm453_vm2, %v1128_v45, %v1129_v46  ;;  %v1025_v57 = vor.u32 %v1024_v51, %v1021_v49  ;;  %v4069_v6 = vcombine.low %v1331_v4, %v5957_v2  ;;  %v4095_v31 = vcombine.low %v1463_v30, %v5957_v2 }
 0x1ea   : > { %v1027_v52 = vshrl.u32 %v4010_v48, 16  ;;  %v1030_v53 = vshll.u32 %v4010_v48, 16  ;;  %4914 = vmatmul.mubr.bf16.vlgmr.msra.gmra.mxu0 %v1130_v50 }
 0x1eb   : > { %4938 = vmatpush3.bf16.msra.mxu0 %v5372_v47  ;;  %4953 = vmatprep.mubr.msk.bf16.mxu0 %vm5580_vm0, %v5579_v1  ;;  %v1362_v9 = vshll.u32 %v4069_v6, 16  ;;  %v1360_v16 = vshrl.u32 %v4069_v6, 16  ;;  %v1484_v33 = vrot.slane %v4095_v31, 1 }
 0x1ec   : > { %v1029_v54 = vrot.slane %v1027_v52, 3  ;;  %v1032_v55 = vrot.slane %v1030_v53, 4  ;;  %4939 = vmatprep.subr.bf16.mxu0 %v5579_v1 }
 0x1ed   : > { %v1364_v13 = vrot.slane %v1362_v9, 1  ;;  %v1486_v35 = vsel %vm811_vm5, %v1484_v33, %v1485_v34  ;;  %v5403_v9 = vld [vmem:[%s6714_s1 + $0x2b0] sm:$0xff]  }
 0x1ee   : > { %v1033_v58 = vor.u32 %v1032_v55, %v1029_v54 }
 0x1ef   : > { %4940 = vmatpush3.bf16.msra.mxu0 %v5375_v56  ;;  %v1365_v18 = vor.u32 %v1364_v13, %v1360_v16  ;;  %v5407_v13 = vld [vmem:[%s6714_s1 + $0x2a0] sm:$0xff]  }
 0x1f0   : > { %v1034_v60 = vsel %vm342_vm3, %v1025_v57, %v1033_v58  ;;  %4941 = vmatprep.subr.bf16.mxu0 %v5579_v1  ;;  %v4105_v58 = vld [vmem:[%s6715_s2 + $0x1] ss:$0 sm:$0xff] }
 0x1f1   : > { %4894 = vmatmul.mubr.bf16.vlgmr.msra.gmra.mxu1 %v1034_v60  ;;  %v1370_v20 = vsel %vm685_vm4, %v1365_v18, %v1369_v19  ;;  %v5408_v16 = vld [vmem:[%s6714_s1 + $0x2e0] sm:$0xff]   ;;  %v5410_v18 = vld [vmem:[%s6714_s1 + $0x2d8] sm:$0xff]   ;;  %v5413_v19 = vld [vmem:[%s6714_s1 + $0x288] sm:$0xff]  }
 0x1f2   : > { %4918 = vmatpush3.bf16.msra.mxu1 %v5374_v59  ;;  %4933 = vmatprep.mubr.msk.bf16.mxu1 %vm5580_vm0, %v5579_v1 }
 0x1f3   : > { %4919 = vmatprep.subr.bf16.mxu1 %v5579_v1  ;;  %4942 = vmatpush3.bf16.msra.mxu0 %v5377_v61 }
 0x1f4   : > { %4943 = vmatprep.subr.bf16.mxu0 %v5579_v1 }
 0x1f6   : > { %4920 = vmatpush3.bf16.msra.mxu1 %v5376_v62 }
 0x1f7   : > { %4921 = vmatprep.subr.bf16.mxu1 %v5579_v1  ;;  %4944 = vmatpush3.bf16.msra.mxu0 %v5379_v63 }
 0x1f8   : > { %4945 = vmatprep.subr.bf16.mxu0 %v5579_v1 }
 0x1fa   : > { %4922 = vmatpush3.bf16.msra.mxu1 %v5378_v0 }
 0x1fb   : > { %4923 = vmatprep.subr.bf16.mxu1 %v5579_v1  ;;  %4946 = vmatpush3.bf16.msra.mxu0 %v5381_v3 }
 0x1fc   : > { %4947 = vmatprep.subr.bf16.mxu0 %v5579_v1 }
 0x1fe   : > { %4924 = vmatpush3.bf16.msra.mxu1 %v5380_v5 }
 0x1ff   : > { %4925 = vmatprep.subr.bf16.mxu1 %v5579_v1  ;;  %4948 = vmatpush3.bf16.msra.mxu0 %v5383_v7 }
 0x200   : > { %4949 = vmatprep.subr.bf16.mxu0 %v5579_v1 }
 0x202   : > { %4926 = vmatpush3.bf16.msra.mxu1 %v5382_v8  ;;  %v5401_v8 = vld [vmem:[%s6714_s1 + $0x2b8] sm:$0xff]  }
 0x203   : > { %4927 = vmatprep.subr.bf16.mxu1 %v5579_v1  ;;  %4950 = vmatpush3.bf16.msra.mxu0 %v5385_v10  ;;  %v5402_v10 = vld [vmem:[%s6714_s1 + $0x2f8] sm:$0xff]  }
 0x204   : > { %4951 = vmatprep.subr.bf16.mxu0 %v5579_v1 }
 0x206   : > { %4928 = vmatpush3.bf16.msra.mxu1 %v5384_v12  ;;  %v5404_v12 = vld [vmem:[%s6714_s1 + $0x2f0] sm:$0xff]  }
 0x207   : > { %4929 = vmatprep.subr.bf16.mxu1 %v5579_v1  ;;  %4952 = vmatpush3.bf16.msra.mxu0 %v5387_v15  ;;  %v5409_v15 = vld [vmem:[%s6714_s1 + $0x298] sm:$0xff]  }
 0x208   : > { %4977 = vmatprep.subr.bf16.mxu0 %v5579_v1 }
 0x20a   : > { %4930 = vmatpush3.bf16.msra.mxu1 %v5386_v17  ;;  %4954 = vmatmul.mubr.bf16.vlgmr.msra.gmra.mxu0 %v1370_v20  ;;  %v5411_v17 = vld [vmem:[%s6714_s1 + $0x290] sm:$0xff]  }
 0x20b   : > { %4931 = vmatprep.subr.bf16.mxu1 %v5579_v1  ;;  %4993 = vmatprep.mubr.msk.bf16.mxu0 %vm5580_vm0, %v5579_v1  ;;  %v5412_v20 = vld [vmem:[%s6714_s1 + $0x2d0] sm:$0xff]  }
 0x20c   : > { %4978 = vmatpush3.bf16.msra.mxu0 %v5402_v10  ;;  %v5421_v10 = vld [vmem:[%s6714_s1 + $0x338] sm:$0xff]  }
 0x20d   : > { %4979 = vmatprep.subr.bf16.mxu0 %v5579_v1 }
 0x20e   : > { %4932 = vmatpush3.bf16.msra.mxu1 %v5390_v21  ;;  %v5415_v21 = vld [vmem:[%s6714_s1 + $0x280] sm:$0xff]  }
 0x20f   : > { %4957 = vmatprep.subr.bf16.mxu1 %v5579_v1 }
 0x210   : > { %4980 = vmatpush3.bf16.msra.mxu0 %v5404_v12  ;;  %v5424_v12 = vld [vmem:[%s6714_s1 + $0x368] sm:$0xff]  }
 0x211   : > { %4934 = vmatmul.mubr.bf16.vlgmr.msra.gmra.mxu1 %v4044_v23  ;;  %4981 = vmatprep.subr.bf16.mxu0 %v5579_v1  ;;  %v5416_v23 = vld [vmem:[%s6714_s1 + $0x2c0] sm:$0xff]  }
 0x212   : > { %4958 = vmatpush3.bf16.msra.mxu1 %v5392_v22  ;;  %4973 = vmatprep.mubr.msk.bf16.mxu1 %vm5580_vm0, %v5579_v1  ;;  %v5414_v22 = vld [vmem:[%s6714_s1 + $0x2c8] sm:$0xff]  }
 0x213   : > { %4959 = vmatprep.subr.bf16.mxu1 %v5579_v1 }
 0x214   : > { %4982 = vmatpush3.bf16.msra.mxu0 %v5406_v14  ;;  %v5426_v14 = vld [vmem:[%s6714_s1 + $0x360] sm:$0xff]  }
 0x215   : > { %4983 = vmatprep.subr.bf16.mxu0 %v5579_v1 }
 0x216   : > { %4960 = vmatpush3.bf16.msra.mxu1 %v5393_v24 }
 0x217   : > { %4961 = vmatprep.subr.bf16.mxu1 %v5579_v1 }
 0x218   : > { %4984 = vmatpush3.bf16.msra.mxu0 %v5408_v16 }
 0x219   : > { %4985 = vmatprep.subr.bf16.mxu0 %v5579_v1 }
 0x21a   : > { %4962 = vmatpush3.bf16.msra.mxu1 %v5394_v25 }
 0x21b   : > { %4963 = vmatprep.subr.bf16.mxu1 %v5579_v1 }
 0x21c   : > { %4986 = vmatpush3.bf16.msra.mxu0 %v5410_v18 }
 0x21d   : > { %4987 = vmatprep.subr.bf16.mxu0 %v5579_v1 }
 0x21e   : > { %4964 = vmatpush3.bf16.msra.mxu1 %v5395_v26 }
 0x21f   : > { %4965 = vmatprep.subr.bf16.mxu1 %v5579_v1 }
 0x220   : > { %4988 = vmatpush3.bf16.msra.mxu0 %v5412_v20 }
 0x221   : > { %4989 = vmatprep.subr.bf16.mxu0 %v5579_v1 }
 0x222   : > { %4966 = vmatpush3.bf16.msra.mxu1 %v5396_v27 }
 0x223   : > { %4967 = vmatprep.subr.bf16.mxu1 %v5579_v1 }
 0x224   : > { %4990 = vmatpush3.bf16.msra.mxu0 %v5414_v22  ;;  %v5429_v22 = vld [vmem:[%s6714_s1 + $0x318] sm:$0xff]  }
 0x225   : > { %4991 = vmatprep.subr.bf16.mxu0 %v5579_v1 }
 0x226   : > { %4968 = vmatpush3.bf16.msra.mxu1 %v5397_v28 }
 0x227   : > { %4969 = vmatprep.subr.bf16.mxu1 %v5579_v1 }
 0x228   : > { %4992 = vmatpush3.bf16.msra.mxu0 %v5416_v23 }
 0x229   : > { %5017 = vmatprep.subr.bf16.mxu0 %v5579_v1 }
 0x22a   : > { %4970 = vmatpush3.bf16.msra.mxu1 %v5398_v29 }
 0x22b   : > { %4971 = vmatprep.subr.bf16.mxu1 %v5579_v1 }
 0x22e   : > { %4972 = vmatpush3.bf16.msra.mxu1 %v5399_v32 }
 0x22f   : > { %4997 = vmatprep.subr.bf16.mxu1 %v5579_v1 }
 0x231   : > { %4974 = vmatmul.mubr.bf16.vlgmr.msra.gmra.mxu1 %v1486_v35 }
 0x232   : > { %5013 = vmatprep.mubr.msk.bf16.mxu1 %vm5580_vm0, %v5579_v1  ;;  %4998 = vmatpush3.bf16.msra.mxu1 %v5401_v8 }
 0x233   : > { %4999 = vmatprep.subr.bf16.mxu1 %v5579_v1 }
 0x236   : > { %5000 = vmatpush3.bf16.msra.mxu1 %v5403_v9 }
 0x237   : > { %5001 = vmatprep.subr.bf16.mxu1 %v5579_v1 }
 0x23a   : > { %5002 = vmatpush3.bf16.msra.mxu1 %v5405_v11 }
 0x23b   : > { %5003 = vmatprep.subr.bf16.mxu1 %v5579_v1 }
 0x23e   : > { %5004 = vmatpush3.bf16.msra.mxu1 %v5407_v13  ;;  %v5423_v13 = vld [vmem:[%s6714_s1 + $0x330] sm:$0xff]  }
 0x23f   : > { %5005 = vmatprep.subr.bf16.mxu1 %v5579_v1 }
 0x242   : > { %5006 = vmatpush3.bf16.msra.mxu1 %v5409_v15  ;;  %v5425_v15 = vld [vmem:[%s6714_s1 + $0x328] sm:$0xff]  }
 0x243   : > { %5007 = vmatprep.subr.bf16.mxu1 %v5579_v1 }
 0x246   : > { %5008 = vmatpush3.bf16.msra.mxu1 %v5411_v17  ;;  %v5428_v17 = vld [vmem:[%s6714_s1 + $0x358] sm:$0xff]  }
 0x247   : > { %5009 = vmatprep.subr.bf16.mxu1 %v5579_v1 }
 0x24a   : > { %5010 = vmatpush3.bf16.msra.mxu1 %v5413_v19  ;;  %v5427_v19 = vld [vmem:[%s6714_s1 + $0x320] sm:$0xff]  }
 0x24b   : > { %5011 = vmatprep.subr.bf16.mxu1 %v5579_v1 }
 0x24e   : > { %5012 = vmatpush3.bf16.msra.mxu1 %v5415_v21  ;;  %v5430_v21 = vld [vmem:[%s6714_s1 + $0x350] sm:$0xff]  }
 0x24f   : > { %5037 = vmatprep.subr.bf16.mxu1 %v5579_v1 }
 0x2aa   : > { %v1214_v36 = vpop.f32.mrf.mxu0 }
 0x2ac   : > { %v4915_v37 = vpop.f32.mrf.mxu0 }
 0x2ae   : > { %v1217_v38 = vpop.f32.mrf.mxu0 }
 0x2b0   : > { %v4916_v40 = vpop.f32.mrf.mxu0 }
 0x2b1   : > { %v1118_v39 = vpop.f32.mrf.mxu1  ;;  %v4107_v40 = vld [vmem:[%s6716_s3 + $0x1] ss:$0 sm:$0xff] }
 0x2b2   : > { %v1215_v52 = vadd.f32 %v1214_v36, %v1118_v39 }
 0x2b3   : > { %v4895_v41 = vpop.f32.mrf.mxu1 }
 0x2b5   : > { %v1121_v42 = vpop.f32.mrf.mxu1 }
 0x2b6   : > { %v1218_v54 = vadd.f32 %v1217_v38, %v1121_v42  ;;  %v4109_v42 = vld [vmem:[%s6717_s4 + $0x1] ss:$0 sm:$0xff] }
 0x2b7   : > { %v4896_v43 = vpop.f32.mrf.mxu1 }
 0x2ca   : > { %v1454_v44 = vpop.f32.mrf.mxu0 }
 0x2cc   : > { %v4955_v45 = vpop.f32.mrf.mxu0 }
 0x2ce   : > { %v1457_v46 = vpop.f32.mrf.mxu0 }
 0x2d0   : > { %v4956_v48 = vpop.f32.mrf.mxu0 }
 0x2d1   : > { %v1322_v47 = vpop.f32.mrf.mxu1 }
 0x2d2   : > { %v1329_v53 = vadd.f32 %v1322_v47, %v1215_v52  ;;  %v1647_v52 = vld [vmem:[#allocation2] sm:$0x8] }
 0x2d3   : > { %v4935_v49 = vpop.f32.mrf.mxu1 }
 0x2d4   : > { %v1461_v56 = vadd.f32 %v1454_v44, %v1329_v53 }
 0x2d5   : > { %v1325_v50 = vpop.f32.mrf.mxu1 }
 0x2d6   : > { %v1330_v55 = vadd.f32 %v1325_v50, %v1218_v54 }
 0x2d7   : > { %v4936_v51 = vpop.f32.mrf.mxu1 }
 0x2d8   : > { %v1462_v62 = vadd.f32 %v1457_v46, %v1330_v55 }
 0x2f1   : > { %v1570_v57 = vpop.f32.mrf.mxu1 }
 0x2f2   : > { %v1577_v59 = vadd.f32 %v1570_v57, %v1461_v56 }
 0x2f3   : > { %v4975_v60 = vpop.f32.mrf.mxu1 }
 0x2f4   : > { %v1587_v61 = vadd.f32 %v4105_v58, %v1577_v59 }
 0x2f5   : > { %v1573_v63 = vpop.f32.mrf.mxu1 }
 0x2f6   : > { %v6044_v0 = vmax.f32 %v1587_v61, 0.0  ;;  %v1578_v2 = vadd.f32 %v1573_v63, %v1462_v62  ;;  %v5419_v61 = vld [vmem:[%s6714_s1 + $0x378] sm:$0xff]  }
 0x2f7   : > { %v4976_v3 = vpop.f32.mrf.mxu1 }
 0x2f8   : > { %v1588_v4 = vadd.f32 %v4105_v58, %v1578_v2  ;;  %1591 = vadd.xlane.f32.xlu0 %v6044_v0  ;;  %v1597_v6 = vmul.f32 %v6044_v0, %v6044_v0 }
 0x2fa   : > { %v6047_v5 = vmax.f32 %v1588_v4, 0.0 }
 0x2fc   : > { %1599 = vadd.xlane.f32.xlu0 %v1597_v6  ;;  %1593 = vadd.xlane.f32.xlu1 %v6047_v5  ;;  %v1598_v7 = vmul.f32 %v6047_v5, %v6047_v5 }
 0x300   : > { %1601 = vadd.xlane.f32.xlu1 %v1598_v7  ;;  %v5422_v7 = vld [vmem:[%s6714_s1 + $0x370] sm:$0xff]  }
 0x381   : > { %v1592_v24 = vpop.xlane.xlu0 %1591 }
 0x382   : > { %v1595_v25 = vmul.f32 0.03125, %v1592_v24  ;;  %v5432_v24 = vld [vmem:[%s6714_s1 + $0x348] sm:$0xff]  }
 0x384   : > { %v1605_v28 = vmul.f32 %v1595_v25, %v1595_v25  ;;  %v1609_v38 = vsub.f32 %v6044_v0, %v1595_v25  ;;  %v5436_v25 = vld [vmem:[#allocation2 + $0xc] ss:$0 sps:$4 sm:$0x11]  }
 0x385   : > { %v1600_v26 = vpop.xlane.xlu0 %1599  ;;  %v1594_v27 = vpop.xlane.xlu1 %1593 }
 0x386   : > { %v1603_v29 = vmul.f32 0.03125, %v1600_v26  ;;  %v1596_v30 = vmul.f32 0.03125, %v1594_v27  ;;  %v5431_v26 = vld [vmem:[%s6714_s1 + $0x310] sm:$0xff]  }
 0x388   : > { %v1607_v31 = vsub.f32 %v1603_v29, %v1605_v28  ;;  %v1606_v34 = vmul.f32 %v1596_v30, %v1596_v30  ;;  %v1610_v44 = vsub.f32 %v6047_v5, %v1596_v30  ;;  %v2042_v28 = vshll.u32 %v5436_v25, 16  ;;  %v5434_v29 = vld [vmem:[%s6714_s1 + $0x340] sm:$0xff]  }
 0x389   : > { %v1602_v32 = vpop.xlane.xlu1 %1601 }
 0x38a   : > { %v1611_v33 = vadd.f32 1e-05, %v1607_v31  ;;  %v1604_v35 = vmul.f32 0.03125, %v1602_v32  ;;  %v5433_v31 = vld [vmem:[%s6714_s1 + $0x308] sm:$0xff]  }
 0x38c   : > { %5555 = vrsqrt.f32 %v1611_v33  ;;  %v1608_v36 = vsub.f32 %v1604_v35, %v1606_v34  ;;  %v2044_v33 = vrot.slane %v2042_v28, 1  ;;  %v5437_v35 = vld [vmem:[%s6714_s1 + $0x300] sm:$0xff]   ;;  %v5453_v28 = vld [vmem:[%s6714_s1 + $0x428] sm:$0xff]  }
 0x38e   : > { %v1612_v37 = vadd.f32 1e-05, %v1608_v36  ;;  %v5439_v36 = vld [vmem:[%s6714_s1 + $0x3b8] sm:$0xff]  }
 0x390   : > { %5557 = vrsqrt.f32 %v1612_v37 }
 0x399   : > { %v5556_v39 = vpop.eup %5555 }
 0x39a   : > { %v1615_v41 = vmul.f32 %v5556_v39, %v1609_v38  ;;  %v5440_v38 = vld [vmem:[%s6714_s1 + $0x3b0] sm:$0xff]   ;;  %v5441_v39 = vld [vmem:[%s6714_s1 + $0x3a8] sm:$0xff]  }
 0x39c   : > { %v1625_v43 = vmul.f32 %v4107_v40, %v1615_v41  ;;  %v5443_v41 = vld [vmem:[%s6714_s1 + $0x398] sm:$0xff]  }
 0x39d   : > { %v5558_v45 = vpop.eup %5557 }
 0x39e   : > { %v1635_v46 = vadd.f32 %v4109_v42, %v1625_v43  ;;  %v1616_v47 = vmul.f32 %v5558_v45, %v1610_v44  ;;  %v5445_v43 = vld [vmem:[%s6714_s1 + $0x388] sm:$0xff]  }
 0x3a0   : > { %v4535_v48 = vpack.c.bf16 %v1635_v46, %v1635_v46  ;;  %v1626_v49 = vmul.f32 %v4107_v40, %v1616_v47  ;;  %v5442_v40 = vld [vmem:[%s6714_s1 + $0x3a0] sm:$0xff]  }
 0x3a1   : > { %v5446_v46 = vld [vmem:[%s6714_s1 + $0x380] sm:$0xff]  }
 0x3a2   : > { %1645 = vst [vmem:[#allocation2 + $0x4] sm:$0xf] %v4535_v48  ;;  %v1636_v50 = vadd.f32 %v4109_v42, %v1626_v49  ;;  %v5444_v42 = vld [vmem:[%s6714_s1 + $0x390] sm:$0xff]   ;;  %v2160_v48 = vrot.slane %v5436_v25, 1  ;;  %v5452_v25 = vld [vmem:[%s6714_s1 + $0x3e8] sm:$0xff]  }
 0x3a4   : > { %v4536_v51 = vpack.c.bf16 %v1636_v50, %v1636_v50 }
 0x3a6   : > { %1646 = vst [vmem:[#allocation2 + $0x8] sm:$0xf] %v4536_v51 }
 0x3a9   : > { %v6126_v53 = vld [vmem:[#allocation2 + $0x4] sm:$0xf] }
 0x3aa   : > { %v4144_v54 = vcombine.low %v1647_v52, %v6126_v53  ;;  %v2006_v18 = vld [vmem:[#allocation2 + $0x4] sm:$0xf] }
 0x3ab   : > { %v2138_v44 = vld [vmem:[#allocation2 + $0x4] sm:$0xe] }
 0x3ac   : > { %v1694_v55 = vshrl.u32 %v4144_v54, 16  ;;  %v1697_v57 = vshll.u32 %v4144_v54, 16  ;;  %v1803_v59 = vrot.slane %v4144_v54, 3 }
 0x3ad   : > { %v5418_v56 = vld [vmem:[#allocation2 + $0x8] ss:$0 sps:$4 sm:$0x77]  }
 0x3ae   : > { %v6129_v58 = vld [vmem:[#allocation2 + $0x8] sm:$0xf]  ;;  %v1804_v60 = vrot.slane %v5418_v56, 3  ;;  %v1696_v63 = vrot.slane %v1694_v55, 3  ;;  %v1699_v2 = vrot.slane %v1697_v57, 4 }
 0x3af   : > { %v4145_v62 = vcombine.low %v6129_v58, %v6129_v58  ;;  %v6165_v16 = vld [vmem:[#allocation2 + $0x8] sm:$0xf]  ;;  %v4179_v37 = vcombine.low %v6126_v53, %v6129_v58 }
 0x3b0   : > { %v1805_v0 = vsel %vm453_vm2, %v1803_v59, %v1804_v60  ;;  %v1700_v8 = vor.u32 %v1699_v2, %v1696_v63  ;;  %v4204_v20 = vcombine.low %v2006_v18, %v6165_v16  ;;  %v4230_v45 = vcombine.low %v2138_v44, %v6165_v16 }
 0x3b1   : > { %v1702_v3 = vshrl.u32 %v4145_v62, 16  ;;  %v1705_v4 = vshll.u32 %v4145_v62, 16  ;;  %5014 = vmatmul.mubr.bf16.vlgmr.msra.gmra.mxu1 %v1805_v0 }
 0x3b2   : > { %5038 = vmatpush3.bf16.msra.mxu1 %v5419_v61  ;;  %5053 = vmatprep.mubr.msk.bf16.mxu1 %vm5580_vm0, %v5579_v1  ;;  %v2037_v23 = vshll.u32 %v4204_v20, 16  ;;  %v2035_v30 = vshrl.u32 %v4204_v20, 16  ;;  %v2159_v47 = vrot.slane %v4230_v45, 1 }
 0x3b3   : > { %v1704_v5 = vrot.slane %v1702_v3, 3  ;;  %v1707_v6 = vrot.slane %v1705_v4, 4  ;;  %5039 = vmatprep.subr.bf16.mxu1 %v5579_v1 }
 0x3b4   : > { %v2039_v27 = vrot.slane %v2037_v23, 1  ;;  %v2161_v49 = vsel %vm811_vm5, %v2159_v47, %v2160_v48  ;;  %v5450_v23 = vld [vmem:[%s6714_s1 + $0x3f0] sm:$0xff]  }
 0x3b5   : > { %v1708_v9 = vor.u32 %v1707_v6, %v1704_v5 }
 0x3b6   : > { %5040 = vmatpush3.bf16.msra.mxu1 %v5422_v7  ;;  %v2040_v32 = vor.u32 %v2039_v27, %v2035_v30  ;;  %v5454_v27 = vld [vmem:[%s6714_s1 + $0x3e0] sm:$0xff]  }
 0x3b7   : > { %v1709_v11 = vsel %vm342_vm3, %v1700_v8, %v1708_v9  ;;  %5041 = vmatprep.subr.bf16.mxu1 %v5579_v1  ;;  %v4240_v9 = vld [vmem:[%s6715_s2 + $0x2] ss:$0 sm:$0xff] }
 0x3b8   : > { %4994 = vmatmul.mubr.bf16.vlgmr.msra.gmra.mxu0 %v1709_v11  ;;  %v2045_v34 = vsel %vm685_vm4, %v2040_v32, %v2044_v33  ;;  %v5455_v30 = vld [vmem:[%s6714_s1 + $0x420] sm:$0xff]   ;;  %v5457_v32 = vld [vmem:[%s6714_s1 + $0x418] sm:$0xff]   ;;  %v5460_v33 = vld [vmem:[%s6714_s1 + $0x3c8] sm:$0xff]  }
 0x3b9   : > { %5018 = vmatpush3.bf16.msra.mxu0 %v5421_v10  ;;  %5033 = vmatprep.mubr.msk.bf16.mxu0 %vm5580_vm0, %v5579_v1 }
 0x3ba   : > { %5019 = vmatprep.subr.bf16.mxu0 %v5579_v1  ;;  %5042 = vmatpush3.bf16.msra.mxu1 %v5424_v12 }
 0x3bb   : > { %5043 = vmatprep.subr.bf16.mxu1 %v5579_v1 }
 0x3bd   : > { %5020 = vmatpush3.bf16.msra.mxu0 %v5423_v13 }
 0x3be   : > { %5021 = vmatprep.subr.bf16.mxu0 %v5579_v1  ;;  %5044 = vmatpush3.bf16.msra.mxu1 %v5426_v14 }
 0x3bf   : > { %5045 = vmatprep.subr.bf16.mxu1 %v5579_v1 }
 0x3c1   : > { %5022 = vmatpush3.bf16.msra.mxu0 %v5425_v15 }
 0x3c2   : > { %5023 = vmatprep.subr.bf16.mxu0 %v5579_v1  ;;  %5046 = vmatpush3.bf16.msra.mxu1 %v5428_v17 }
 0x3c3   : > { %5047 = vmatprep.subr.bf16.mxu1 %v5579_v1 }
 0x3c5   : > { %5024 = vmatpush3.bf16.msra.mxu0 %v5427_v19 }
 0x3c6   : > { %5025 = vmatprep.subr.bf16.mxu0 %v5579_v1  ;;  %5048 = vmatpush3.bf16.msra.mxu1 %v5430_v21 }
 0x3c7   : > { %5049 = vmatprep.subr.bf16.mxu1 %v5579_v1 }
 0x3c9   : > { %5026 = vmatpush3.bf16.msra.mxu0 %v5429_v22  ;;  %v5448_v22 = vld [vmem:[%s6714_s1 + $0x3f8] sm:$0xff]  }
 0x3ca   : > { %5027 = vmatprep.subr.bf16.mxu0 %v5579_v1  ;;  %5050 = vmatpush3.bf16.msra.mxu1 %v5432_v24  ;;  %v5449_v24 = vld [vmem:[%s6714_s1 + $0x438] sm:$0xff]  }
 0x3cb   : > { %5051 = vmatprep.subr.bf16.mxu1 %v5579_v1 }
 0x3cd   : > { %5028 = vmatpush3.bf16.msra.mxu0 %v5431_v26  ;;  %v5451_v26 = vld [vmem:[%s6714_s1 + $0x430] sm:$0xff]  }
 0x3ce   : > { %5029 = vmatprep.subr.bf16.mxu0 %v5579_v1  ;;  %5052 = vmatpush3.bf16.msra.mxu1 %v5434_v29  ;;  %v5456_v29 = vld [vmem:[%s6714_s1 + $0x3d8] sm:$0xff]  }
 0x3cf   : > { %5077 = vmatprep.subr.bf16.mxu1 %v5579_v1 }
 0x3d1   : > { %5030 = vmatpush3.bf16.msra.mxu0 %v5433_v31  ;;  %5054 = vmatmul.mubr.bf16.vlgmr.msra.gmra.mxu1 %v2045_v34  ;;  %v5458_v31 = vld [vmem:[%s6714_s1 + $0x3d0] sm:$0xff]  }
 0x3d2   : > { %5031 = vmatprep.subr.bf16.mxu0 %v5579_v1  ;;  %5093 = vmatprep.mubr.msk.bf16.mxu1 %vm5580_vm0, %v5579_v1  ;;  %v5459_v34 = vld [vmem:[%s6714_s1 + $0x410] sm:$0xff]  }
 0x3d3   : > { %5078 = vmatpush3.bf16.msra.mxu1 %v5449_v24  ;;  %v5468_v24 = vld [vmem:[%s6714_s1 + $0x478] sm:$0xff]  }
 0x3d4   : > { %5079 = vmatprep.subr.bf16.mxu1 %v5579_v1 }
 0x3d5   : > { %5032 = vmatpush3.bf16.msra.mxu0 %v5437_v35  ;;  %v5462_v35 = vld [vmem:[%s6714_s1 + $0x3c0] sm:$0xff]  }
 0x3d6   : > { %5057 = vmatprep.subr.bf16.mxu0 %v5579_v1 }
 0x3d7   : > { %5080 = vmatpush3.bf16.msra.mxu1 %v5451_v26  ;;  %v5471_v26 = vld [vmem:[%s6714_s1 + $0x4a8] sm:$0xff]  }
 0x3d8   : > { %5034 = vmatmul.mubr.bf16.vlgmr.msra.gmra.mxu0 %v4179_v37  ;;  %5081 = vmatprep.subr.bf16.mxu1 %v5579_v1  ;;  %v5463_v37 = vld [vmem:[%s6714_s1 + $0x400] sm:$0xff]  }
 0x3d9   : > { %5058 = vmatpush3.bf16.msra.mxu0 %v5439_v36  ;;  %5073 = vmatprep.mubr.msk.bf16.mxu0 %vm5580_vm0, %v5579_v1  ;;  %v5461_v36 = vld [vmem:[%s6714_s1 + $0x408] sm:$0xff]  }
 0x3da   : > { %5059 = vmatprep.subr.bf16.mxu0 %v5579_v1 }
 0x3db   : > { %5082 = vmatpush3.bf16.msra.mxu1 %v5453_v28  ;;  %v5473_v28 = vld [vmem:[%s6714_s1 + $0x4a0] sm:$0xff]  }
 0x3dc   : > { %5083 = vmatprep.subr.bf16.mxu1 %v5579_v1 }
 0x3dd   : > { %5060 = vmatpush3.bf16.msra.mxu0 %v5440_v38 }
 0x3de   : > { %5061 = vmatprep.subr.bf16.mxu0 %v5579_v1 }
 0x3df   : > { %5084 = vmatpush3.bf16.msra.mxu1 %v5455_v30 }
 0x3e0   : > { %5085 = vmatprep.subr.bf16.mxu1 %v5579_v1 }
 0x3e1   : > { %5062 = vmatpush3.bf16.msra.mxu0 %v5441_v39 }
 0x3e2   : > { %5063 = vmatprep.subr.bf16.mxu0 %v5579_v1 }
 0x3e3   : > { %5086 = vmatpush3.bf16.msra.mxu1 %v5457_v32 }
 0x3e4   : > { %5087 = vmatprep.subr.bf16.mxu1 %v5579_v1 }
 0x3e5   : > { %5064 = vmatpush3.bf16.msra.mxu0 %v5442_v40 }
 0x3e6   : > { %5065 = vmatprep.subr.bf16.mxu0 %v5579_v1 }
 0x3e7   : > { %5088 = vmatpush3.bf16.msra.mxu1 %v5459_v34 }
 0x3e8   : > { %5089 = vmatprep.subr.bf16.mxu1 %v5579_v1 }
 0x3e9   : > { %5066 = vmatpush3.bf16.msra.mxu0 %v5443_v41 }
 0x3ea   : > { %5067 = vmatprep.subr.bf16.mxu0 %v5579_v1 }
 0x3eb   : > { %5090 = vmatpush3.bf16.msra.mxu1 %v5461_v36  ;;  %v5476_v36 = vld [vmem:[%s6714_s1 + $0x458] sm:$0xff]  }
 0x3ec   : > { %5091 = vmatprep.subr.bf16.mxu1 %v5579_v1 }
 0x3ed   : > { %5068 = vmatpush3.bf16.msra.mxu0 %v5444_v42 }
 0x3ee   : > { %5069 = vmatprep.subr.bf16.mxu0 %v5579_v1 }
 0x3ef   : > { %5092 = vmatpush3.bf16.msra.mxu1 %v5463_v37 }
 0x3f0   : > { %5117 = vmatprep.subr.bf16.mxu1 %v5579_v1 }
 0x3f1   : > { %5070 = vmatpush3.bf16.msra.mxu0 %v5445_v43 }
 0x3f2   : > { %5071 = vmatprep.subr.bf16.mxu0 %v5579_v1 }
 0x3f5   : > { %5072 = vmatpush3.bf16.msra.mxu0 %v5446_v46 }
 0x3f6   : > { %5097 = vmatprep.subr.bf16.mxu0 %v5579_v1 }
 0x3f8   : > { %5074 = vmatmul.mubr.bf16.vlgmr.msra.gmra.mxu0 %v2161_v49 }
 0x3f9   : > { %5113 = vmatprep.mubr.msk.bf16.mxu0 %vm5580_vm0, %v5579_v1  ;;  %5098 = vmatpush3.bf16.msra.mxu0 %v5448_v22 }
 0x3fa   : > { %5099 = vmatprep.subr.bf16.mxu0 %v5579_v1 }
 0x3fd   : > { %5100 = vmatpush3.bf16.msra.mxu0 %v5450_v23 }
 0x3fe   : > { %5101 = vmatprep.subr.bf16.mxu0 %v5579_v1 }
 0x401   : > { %5102 = vmatpush3.bf16.msra.mxu0 %v5452_v25 }
 0x402   : > { %5103 = vmatprep.subr.bf16.mxu0 %v5579_v1 }
 0x405   : > { %5104 = vmatpush3.bf16.msra.mxu0 %v5454_v27  ;;  %v5470_v27 = vld [vmem:[%s6714_s1 + $0x470] sm:$0xff]  }
 0x406   : > { %5105 = vmatprep.subr.bf16.mxu0 %v5579_v1 }
 0x409   : > { %5106 = vmatpush3.bf16.msra.mxu0 %v5456_v29  ;;  %v5472_v29 = vld [vmem:[%s6714_s1 + $0x468] sm:$0xff]  }
 0x40a   : > { %5107 = vmatprep.subr.bf16.mxu0 %v5579_v1 }
 0x40d   : > { %5108 = vmatpush3.bf16.msra.mxu0 %v5458_v31  ;;  %v5475_v31 = vld [vmem:[%s6714_s1 + $0x498] sm:$0xff]  }
 0x40e   : > { %5109 = vmatprep.subr.bf16.mxu0 %v5579_v1 }
 0x411   : > { %5110 = vmatpush3.bf16.msra.mxu0 %v5460_v33  ;;  %v5474_v33 = vld [vmem:[%s6714_s1 + $0x460] sm:$0xff]  }
 0x412   : > { %5111 = vmatprep.subr.bf16.mxu0 %v5579_v1 }
 0x415   : > { %5112 = vmatpush3.bf16.msra.mxu0 %v5462_v35  ;;  %v5477_v35 = vld [vmem:[%s6714_s1 + $0x490] sm:$0xff]  }
 0x416   : > { %5137 = vmatprep.subr.bf16.mxu0 %v5579_v1 }
 0x471   : > { %v1889_v50 = vpop.f32.mrf.mxu1 }
 0x473   : > { %v5015_v51 = vpop.f32.mrf.mxu1 }
 0x475   : > { %v1892_v52 = vpop.f32.mrf.mxu1 }
 0x477   : > { %v5016_v54 = vpop.f32.mrf.mxu1 }
 0x478   : > { %v1793_v53 = vpop.f32.mrf.mxu0  ;;  %v4242_v54 = vld [vmem:[%s6716_s3 + $0x2] ss:$0 sm:$0xff] }
 0x479   : > { %v1890_v3 = vadd.f32 %v1889_v50, %v1793_v53 }
 0x47a   : > { %v4995_v55 = vpop.f32.mrf.mxu0 }
 0x47c   : > { %v1796_v56 = vpop.f32.mrf.mxu0 }
 0x47d   : > { %v1893_v5 = vadd.f32 %v1892_v52, %v1796_v56  ;;  %v4244_v56 = vld [vmem:[%s6717_s4 + $0x2] ss:$0 sm:$0xff] }
 0x47e   : > { %v4996_v57 = vpop.f32.mrf.mxu0 }
 0x491   : > { %v2129_v58 = vpop.f32.mrf.mxu1 }
 0x493   : > { %v5055_v59 = vpop.f32.mrf.mxu1 }
 0x495   : > { %v2132_v60 = vpop.f32.mrf.mxu1 }
 0x497   : > { %v5056_v62 = vpop.f32.mrf.mxu1 }
 0x498   : > { %v1997_v61 = vpop.f32.mrf.mxu0 }
 0x499   : > { %v2004_v4 = vadd.f32 %v1997_v61, %v1890_v3  ;;  %v2322_v3 = vld [vmem:[#allocation2] sm:$0x8] }
 0x49a   : > { %v5035_v63 = vpop.f32.mrf.mxu0 }
 0x49b   : > { %v2136_v7 = vadd.f32 %v2129_v58, %v2004_v4 }
 0x49c   : > { %v2000_v0 = vpop.f32.mrf.mxu0 }
 0x49d   : > { %v2005_v6 = vadd.f32 %v2000_v0, %v1893_v5 }
 0x49e   : > { %v5036_v2 = vpop.f32.mrf.mxu0 }
 0x49f   : > { %v2137_v13 = vadd.f32 %v2132_v60, %v2005_v6 }
 0x4b8   : > { %v2245_v8 = vpop.f32.mrf.mxu0 }
 0x4b9   : > { %v2252_v10 = vadd.f32 %v2245_v8, %v2136_v7 }
 0x4ba   : > { %v5075_v11 = vpop.f32.mrf.mxu0 }
 0x4bb   : > { %v2262_v12 = vadd.f32 %v4240_v9, %v2252_v10 }
 0x4bc   : > { %v2248_v14 = vpop.f32.mrf.mxu0 }
 0x4bd   : > { %v6252_v15 = vmax.f32 %v2262_v12, 0.0  ;;  %v2253_v16 = vadd.f32 %v2248_v14, %v2137_v13  ;;  %v5466_v12 = vld [vmem:[%s6714_s1 + $0x4b8] sm:$0xff]  }
 0x4be   : > { %v5076_v17 = vpop.f32.mrf.mxu0 }
 0x4bf   : > { %v2263_v18 = vadd.f32 %v4240_v9, %v2253_v16  ;;  %2266 = vadd.xlane.f32.xlu0 %v6252_v15  ;;  %v2272_v20 = vmul.f32 %v6252_v15, %v6252_v15 }
 0x4c1   : > { %v6255_v19 = vmax.f32 %v2263_v18, 0.0 }
 0x4c3   : > { %2274 = vadd.xlane.f32.xlu0 %v2272_v20  ;;  %2268 = vadd.xlane.f32.xlu1 %v6255_v19  ;;  %v2273_v21 = vmul.f32 %v6255_v19, %v6255_v19 }
 0x4c7   : > { %2276 = vadd.xlane.f32.xlu1 %v2273_v21  ;;  %v5469_v21 = vld [vmem:[%s6714_s1 + $0x4b0] sm:$0xff]  }
 0x548   : > { %v2267_v38 = vpop.xlane.xlu0 %2266 }
 0x549   : > { %v2270_v39 = vmul.f32 0.03125, %v2267_v38  ;;  %v5479_v38 = vld [vmem:[%s6714_s1 + $0x488] sm:$0xff]  }
 0x54b   : > { %v2280_v42 = vmul.f32 %v2270_v39, %v2270_v39  ;;  %v2284_v52 = vsub.f32 %v6252_v15, %v2270_v39  ;;  %v5483_v39 = vld [vmem:[#allocation2 + $0xc] ss:$0 sps:$4 sm:$0x11]  }
 0x54c   : > { %v2275_v40 = vpop.xlane.xlu0 %2274  ;;  %v2269_v41 = vpop.xlane.xlu1 %2268 }
 0x54d   : > { %v2278_v43 = vmul.f32 0.03125, %v2275_v40  ;;  %v2271_v44 = vmul.f32 0.03125, %v2269_v41  ;;  %v5478_v40 = vld [vmem:[%s6714_s1 + $0x450] sm:$0xff]  }
 0x54f   : > { %v2282_v45 = vsub.f32 %v2278_v43, %v2280_v42  ;;  %v2281_v48 = vmul.f32 %v2271_v44, %v2271_v44  ;;  %v2285_v58 = vsub.f32 %v6255_v19, %v2271_v44  ;;  %v2717_v42 = vshll.u32 %v5483_v39, 16  ;;  %v5481_v43 = vld [vmem:[%s6714_s1 + $0x480] sm:$0xff]  }
 0x550   : > { %v2277_v46 = vpop.xlane.xlu1 %2276 }
 0x551   : > { %v2286_v47 = vadd.f32 1e-05, %v2282_v45  ;;  %v2279_v49 = vmul.f32 0.03125, %v2277_v46  ;;  %v5480_v45 = vld [vmem:[%s6714_s1 + $0x448] sm:$0xff]  }
 0x553   : > { %5559 = vrsqrt.f32 %v2286_v47  ;;  %v2283_v50 = vsub.f32 %v2279_v49, %v2281_v48  ;;  %v2719_v47 = vrot.slane %v2717_v42, 1  ;;  %v5484_v49 = vld [vmem:[%s6714_s1 + $0x440] sm:$0xff]   ;;  %v5500_v42 = vld [vmem:[%s6714_s1 + $0x568] sm:$0xff]  }
 0x555   : > { %v2287_v51 = vadd.f32 1e-05, %v2283_v50  ;;  %v5486_v50 = vld [vmem:[%s6714_s1 + $0x4f8] sm:$0xff]  }
 0x557   : > { %5561 = vrsqrt.f32 %v2287_v51 }
 0x560   : > { %v5560_v53 = vpop.eup %5559 }
 0x561   : > { %v2290_v55 = vmul.f32 %v5560_v53, %v2284_v52  ;;  %v5487_v52 = vld [vmem:[%s6714_s1 + $0x4f0] sm:$0xff]   ;;  %v5488_v53 = vld [vmem:[%s6714_s1 + $0x4e8] sm:$0xff]  }
 0x563   : > { %v2300_v57 = vmul.f32 %v4242_v54, %v2290_v55  ;;  %v5490_v55 = vld [vmem:[%s6714_s1 + $0x4d8] sm:$0xff]  }
 0x564   : > { %v5562_v59 = vpop.eup %5561 }
 0x565   : > { %v2310_v60 = vadd.f32 %v4244_v56, %v2300_v57  ;;  %v2291_v61 = vmul.f32 %v5562_v59, %v2285_v58  ;;  %v5492_v57 = vld [vmem:[%s6714_s1 + $0x4c8] sm:$0xff]  }
 0x567   : > { %v4537_v62 = vpack.c.bf16 %v2310_v60, %v2310_v60  ;;  %v2301_v63 = vmul.f32 %v4242_v54, %v2291_v61  ;;  %v5489_v54 = vld [vmem:[%s6714_s1 + $0x4e0] sm:$0xff]  }
 0x568   : > { %v5493_v60 = vld [vmem:[%s6714_s1 + $0x4c0] sm:$0xff]  }
 0x569   : > { %2320 = vst [vmem:[#allocation2 + $0x4] sm:$0xf] %v4537_v62  ;;  %v2311_v0 = vadd.f32 %v4244_v56, %v2301_v63  ;;  %v5491_v56 = vld [vmem:[%s6714_s1 + $0x4d0] sm:$0xff]   ;;  %v2835_v62 = vrot.slane %v5483_v39, 1  ;;  %v5499_v39 = vld [vmem:[%s6714_s1 + $0x528] sm:$0xff]  }
 0x56b   : > { %v4538_v2 = vpack.c.bf16 %v2311_v0, %v2311_v0 }
 0x56d   : > { %2321 = vst [vmem:[#allocation2 + $0x8] sm:$0xf] %v4538_v2 }
 0x570   : > { %v6334_v4 = vld [vmem:[#allocation2 + $0x4] sm:$0xf] }
 0x571   : > { %v4279_v5 = vcombine.low %v2322_v3, %v6334_v4  ;;  %v2681_v32 = vld [vmem:[#allocation2 + $0x4] sm:$0xf] }
 0x572   : > { %v2813_v58 = vld [vmem:[#allocation2 + $0x4] sm:$0xe] }
 0x573   : > { %v2369_v6 = vshrl.u32 %v4279_v5, 16  ;;  %v2372_v8 = vshll.u32 %v4279_v5, 16  ;;  %v2478_v10 = vrot.slane %v4279_v5, 3 }
 0x574   : > { %v5465_v7 = vld [vmem:[#allocation2 + $0x8] ss:$0 sps:$4 sm:$0x77]  }
 0x575   : > { %v6337_v9 = vld [vmem:[#allocation2 + $0x8] sm:$0xf]  ;;  %v2479_v11 = vrot.slane %v5465_v7, 3  ;;  %v2371_v14 = vrot.slane %v2369_v6, 3  ;;  %v2374_v16 = vrot.slane %v2372_v8, 4 }
 0x576   : > { %v4280_v13 = vcombine.low %v6337_v9, %v6337_v9  ;;  %v6373_v30 = vld [vmem:[#allocation2 + $0x8] sm:$0xf]  ;;  %v4314_v51 = vcombine.low %v6334_v4, %v6337_v9 }
 0x577   : > { %v2480_v15 = vsel %vm453_vm2, %v2478_v10, %v2479_v11  ;;  %v2375_v22 = vor.u32 %v2374_v16, %v2371_v14  ;;  %v4339_v34 = vcombine.low %v2681_v32, %v6373_v30  ;;  %v4365_v59 = vcombine.low %v2813_v58, %v6373_v30 }
 0x578   : > { %v2377_v17 = vshrl.u32 %v4280_v13, 16  ;;  %v2380_v18 = vshll.u32 %v4280_v13, 16  ;;  %5114 = vmatmul.mubr.bf16.vlgmr.msra.gmra.mxu0 %v2480_v15 }
 0x579   : > { %5138 = vmatpush3.bf16.msra.mxu0 %v5466_v12  ;;  %5153 = vmatprep.mubr.msk.bf16.mxu0 %vm5580_vm0, %v5579_v1  ;;  %v2712_v37 = vshll.u32 %v4339_v34, 16  ;;  %v2710_v44 = vshrl.u32 %v4339_v34, 16  ;;  %v2834_v61 = vrot.slane %v4365_v59, 1 }
 0x57a   : > { %v2379_v19 = vrot.slane %v2377_v17, 3  ;;  %v2382_v20 = vrot.slane %v2380_v18, 4  ;;  %5139 = vmatprep.subr.bf16.mxu0 %v5579_v1 }
 0x57b   : > { %v2714_v41 = vrot.slane %v2712_v37, 1  ;;  %v2836_v63 = vsel %vm811_vm5, %v2834_v61, %v2835_v62  ;;  %v5497_v37 = vld [vmem:[%s6714_s1 + $0x530] sm:$0xff]  }
 0x57c   : > { %v2383_v23 = vor.u32 %v2382_v20, %v2379_v19 }
 0x57d   : > { %5140 = vmatpush3.bf16.msra.mxu0 %v5469_v21  ;;  %v2715_v46 = vor.u32 %v2714_v41, %v2710_v44  ;;  %v5501_v41 = vld [vmem:[%s6714_s1 + $0x520] sm:$0xff]  }
 0x57e   : > { %v2384_v25 = vsel %vm342_vm3, %v2375_v22, %v2383_v23  ;;  %5141 = vmatprep.subr.bf16.mxu0 %v5579_v1  ;;  %v4375_v23 = vld [vmem:[%s6715_s2 + $0x3] ss:$0 sm:$0xff] }
 0x57f   : > { %5094 = vmatmul.mubr.bf16.vlgmr.msra.gmra.mxu1 %v2384_v25  ;;  %v2720_v48 = vsel %vm685_vm4, %v2715_v46, %v2719_v47  ;;  %v5502_v44 = vld [vmem:[%s6714_s1 + $0x560] sm:$0xff]   ;;  %v5504_v46 = vld [vmem:[%s6714_s1 + $0x558] sm:$0xff]   ;;  %v5507_v47 = vld [vmem:[%s6714_s1 + $0x508] sm:$0xff]  }
 0x580   : > { %5118 = vmatpush3.bf16.msra.mxu1 %v5468_v24  ;;  %5133 = vmatprep.mubr.msk.bf16.mxu1 %vm5580_vm0, %v5579_v1 }
 0x581   : > { %5119 = vmatprep.subr.bf16.mxu1 %v5579_v1  ;;  %5142 = vmatpush3.bf16.msra.mxu0 %v5471_v26 }
 0x582   : > { %5143 = vmatprep.subr.bf16.mxu0 %v5579_v1 }
 0x584   : > { %5120 = vmatpush3.bf16.msra.mxu1 %v5470_v27 }
 0x585   : > { %5121 = vmatprep.subr.bf16.mxu1 %v5579_v1  ;;  %5144 = vmatpush3.bf16.msra.mxu0 %v5473_v28 }
 0x586   : > { %5145 = vmatprep.subr.bf16.mxu0 %v5579_v1 }
 0x588   : > { %5122 = vmatpush3.bf16.msra.mxu1 %v5472_v29 }
 0x589   : > { %5123 = vmatprep.subr.bf16.mxu1 %v5579_v1  ;;  %5146 = vmatpush3.bf16.msra.mxu0 %v5475_v31 }
 0x58a   : > { %5147 = vmatprep.subr.bf16.mxu0 %v5579_v1 }
 0x58c   : > { %5124 = vmatpush3.bf16.msra.mxu1 %v5474_v33 }
 0x58d   : > { %5125 = vmatprep.subr.bf16.mxu1 %v5579_v1  ;;  %5148 = vmatpush3.bf16.msra.mxu0 %v5477_v35 }
 0x58e   : > { %5149 = vmatprep.subr.bf16.mxu0 %v5579_v1 }
 0x590   : > { %5126 = vmatpush3.bf16.msra.mxu1 %v5476_v36  ;;  %v5495_v36 = vld [vmem:[%s6714_s1 + $0x538] sm:$0xff]  }
 0x591   : > { %5127 = vmatprep.subr.bf16.mxu1 %v5579_v1  ;;  %5150 = vmatpush3.bf16.msra.mxu0 %v5479_v38  ;;  %v5496_v38 = vld [vmem:[%s6714_s1 + $0x578] sm:$0xff]  }
 0x592   : > { %5151 = vmatprep.subr.bf16.mxu0 %v5579_v1 }
 0x594   : > { %5128 = vmatpush3.bf16.msra.mxu1 %v5478_v40  ;;  %v5498_v40 = vld [vmem:[%s6714_s1 + $0x570] sm:$0xff]  }
 0x595   : > { %5129 = vmatprep.subr.bf16.mxu1 %v5579_v1  ;;  %5152 = vmatpush3.bf16.msra.mxu0 %v5481_v43  ;;  %v5503_v43 = vld [vmem:[%s6714_s1 + $0x518] sm:$0xff]  }
 0x596   : > { %5177 = vmatprep.subr.bf16.mxu0 %v5579_v1 }
 0x598   : > { %5130 = vmatpush3.bf16.msra.mxu1 %v5480_v45  ;;  %5154 = vmatmul.mubr.bf16.vlgmr.msra.gmra.mxu0 %v2720_v48  ;;  %v5505_v45 = vld [vmem:[%s6714_s1 + $0x510] sm:$0xff]  }
 0x599   : > { %5131 = vmatprep.subr.bf16.mxu1 %v5579_v1  ;;  %5193 = vmatprep.mubr.msk.bf16.mxu0 %vm5580_vm0, %v5579_v1  ;;  %v5506_v48 = vld [vmem:[%s6714_s1 + $0x550] sm:$0xff]  }
 0x59a   : > { %5178 = vmatpush3.bf16.msra.mxu0 %v5496_v38  ;;  %v5515_v38 = vld [vmem:[%s6714_s1 + $0x5b8] sm:$0xff]  }
 0x59b   : > { %5179 = vmatprep.subr.bf16.mxu0 %v5579_v1 }
 0x59c   : > { %5132 = vmatpush3.bf16.msra.mxu1 %v5484_v49  ;;  %v5509_v49 = vld [vmem:[%s6714_s1 + $0x500] sm:$0xff]  }
 0x59d   : > { %5157 = vmatprep.subr.bf16.mxu1 %v5579_v1 }
 0x59e   : > { %5180 = vmatpush3.bf16.msra.mxu0 %v5498_v40  ;;  %v5518_v40 = vld [vmem:[%s6714_s1 + $0x5e8] sm:$0xff]  }
 0x59f   : > { %5134 = vmatmul.mubr.bf16.vlgmr.msra.gmra.mxu1 %v4314_v51  ;;  %5181 = vmatprep.subr.bf16.mxu0 %v5579_v1  ;;  %v5510_v51 = vld [vmem:[%s6714_s1 + $0x540] sm:$0xff]  }
 0x5a0   : > { %5158 = vmatpush3.bf16.msra.mxu1 %v5486_v50  ;;  %5173 = vmatprep.mubr.msk.bf16.mxu1 %vm5580_vm0, %v5579_v1  ;;  %v5508_v50 = vld [vmem:[%s6714_s1 + $0x548] sm:$0xff]  }
 0x5a1   : > { %5159 = vmatprep.subr.bf16.mxu1 %v5579_v1 }
 0x5a2   : > { %5182 = vmatpush3.bf16.msra.mxu0 %v5500_v42  ;;  %v5520_v42 = vld [vmem:[%s6714_s1 + $0x5e0] sm:$0xff]  }
 0x5a3   : > { %5183 = vmatprep.subr.bf16.mxu0 %v5579_v1 }
 0x5a4   : > { %5160 = vmatpush3.bf16.msra.mxu1 %v5487_v52 }
 0x5a5   : > { %5161 = vmatprep.subr.bf16.mxu1 %v5579_v1 }
 0x5a6   : > { %5184 = vmatpush3.bf16.msra.mxu0 %v5502_v44 }
 0x5a7   : > { %5185 = vmatprep.subr.bf16.mxu0 %v5579_v1 }
 0x5a8   : > { %5162 = vmatpush3.bf16.msra.mxu1 %v5488_v53 }
 0x5a9   : > { %5163 = vmatprep.subr.bf16.mxu1 %v5579_v1 }
 0x5aa   : > { %5186 = vmatpush3.bf16.msra.mxu0 %v5504_v46 }
 0x5ab   : > { %5187 = vmatprep.subr.bf16.mxu0 %v5579_v1 }
 0x5ac   : > { %5164 = vmatpush3.bf16.msra.mxu1 %v5489_v54 }
 0x5ad   : > { %5165 = vmatprep.subr.bf16.mxu1 %v5579_v1 }
 0x5ae   : > { %5188 = vmatpush3.bf16.msra.mxu0 %v5506_v48 }
 0x5af   : > { %5189 = vmatprep.subr.bf16.mxu0 %v5579_v1 }
 0x5b0   : > { %5166 = vmatpush3.bf16.msra.mxu1 %v5490_v55 }
 0x5b1   : > { %5167 = vmatprep.subr.bf16.mxu1 %v5579_v1 }
 0x5b2   : > { %5190 = vmatpush3.bf16.msra.mxu0 %v5508_v50  ;;  %v5523_v50 = vld [vmem:[%s6714_s1 + $0x598] sm:$0xff]  }
 0x5b3   : > { %5191 = vmatprep.subr.bf16.mxu0 %v5579_v1 }
 0x5b4   : > { %5168 = vmatpush3.bf16.msra.mxu1 %v5491_v56 }
 0x5b5   : > { %5169 = vmatprep.subr.bf16.mxu1 %v5579_v1 }
 0x5b6   : > { %5192 = vmatpush3.bf16.msra.mxu0 %v5510_v51 }
 0x5b7   : > { %5217 = vmatprep.subr.bf16.mxu0 %v5579_v1 }
 0x5b8   : > { %5170 = vmatpush3.bf16.msra.mxu1 %v5492_v57 }
 0x5b9   : > { %5171 = vmatprep.subr.bf16.mxu1 %v5579_v1 }
 0x5bc   : > { %5172 = vmatpush3.bf16.msra.mxu1 %v5493_v60 }
 0x5bd   : > { %5197 = vmatprep.subr.bf16.mxu1 %v5579_v1 }
 0x5bf   : > { %5174 = vmatmul.mubr.bf16.vlgmr.msra.gmra.mxu1 %v2836_v63 }
 0x5c0   : > { %5213 = vmatprep.mubr.msk.bf16.mxu1 %vm5580_vm0, %v5579_v1  ;;  %5198 = vmatpush3.bf16.msra.mxu1 %v5495_v36 }
 0x5c1   : > { %5199 = vmatprep.subr.bf16.mxu1 %v5579_v1 }
 0x5c4   : > { %5200 = vmatpush3.bf16.msra.mxu1 %v5497_v37 }
 0x5c5   : > { %5201 = vmatprep.subr.bf16.mxu1 %v5579_v1 }
 0x5c8   : > { %5202 = vmatpush3.bf16.msra.mxu1 %v5499_v39 }
 0x5c9   : > { %5203 = vmatprep.subr.bf16.mxu1 %v5579_v1 }
 0x5cc   : > { %5204 = vmatpush3.bf16.msra.mxu1 %v5501_v41  ;;  %v5517_v41 = vld [vmem:[%s6714_s1 + $0x5b0] sm:$0xff]  }
 0x5cd   : > { %5205 = vmatprep.subr.bf16.mxu1 %v5579_v1 }
 0x5d0   : > { %5206 = vmatpush3.bf16.msra.mxu1 %v5503_v43  ;;  %v5519_v43 = vld [vmem:[%s6714_s1 + $0x5a8] sm:$0xff]  }
 0x5d1   : > { %5207 = vmatprep.subr.bf16.mxu1 %v5579_v1 }
 0x5d4   : > { %5208 = vmatpush3.bf16.msra.mxu1 %v5505_v45  ;;  %v5522_v45 = vld [vmem:[%s6714_s1 + $0x5d8] sm:$0xff]  }
 0x5d5   : > { %5209 = vmatprep.subr.bf16.mxu1 %v5579_v1 }
 0x5d8   : > { %5210 = vmatpush3.bf16.msra.mxu1 %v5507_v47  ;;  %v5521_v47 = vld [vmem:[%s6714_s1 + $0x5a0] sm:$0xff]  }
 0x5d9   : > { %5211 = vmatprep.subr.bf16.mxu1 %v5579_v1 }
 0x5dc   : > { %5212 = vmatpush3.bf16.msra.mxu1 %v5509_v49  ;;  %v5524_v49 = vld [vmem:[%s6714_s1 + $0x5d0] sm:$0xff]  }
 0x5dd   : > { %5237 = vmatprep.subr.bf16.mxu1 %v5579_v1 }
 0x638   : > { %v2564_v0 = vpop.f32.mrf.mxu0 }
 0x63a   : > { %v5115_v2 = vpop.f32.mrf.mxu0 }
 0x63c   : > { %v2567_v3 = vpop.f32.mrf.mxu0 }
 0x63e   : > { %v5116_v5 = vpop.f32.mrf.mxu0 }
 0x63f   : > { %v2468_v4 = vpop.f32.mrf.mxu1  ;;  %v4377_v5 = vld [vmem:[%s6716_s3 + $0x3] ss:$0 sm:$0xff] }
 0x640   : > { %v2565_v17 = vadd.f32 %v2564_v0, %v2468_v4 }
 0x641   : > { %v5095_v6 = vpop.f32.mrf.mxu1 }
 0x643   : > { %v2471_v7 = vpop.f32.mrf.mxu1 }
 0x644   : > { %v2568_v19 = vadd.f32 %v2567_v3, %v2471_v7  ;;  %v4379_v7 = vld [vmem:[%s6717_s4 + $0x3] ss:$0 sm:$0xff] }
 0x645   : > { %v5096_v8 = vpop.f32.mrf.mxu1 }
 0x658   : > { %v2804_v9 = vpop.f32.mrf.mxu0 }
 0x65a   : > { %v5155_v10 = vpop.f32.mrf.mxu0 }
 0x65c   : > { %v2807_v11 = vpop.f32.mrf.mxu0 }
 0x65e   : > { %v5156_v13 = vpop.f32.mrf.mxu0 }
 0x65f   : > { %v2672_v12 = vpop.f32.mrf.mxu1 }
 0x660   : > { %v2679_v18 = vadd.f32 %v2672_v12, %v2565_v17  ;;  %v2997_v17 = vld [vmem:[#allocation2] sm:$0x8] }
 0x661   : > { %v5135_v14 = vpop.f32.mrf.mxu1 }
 0x662   : > { %v2811_v21 = vadd.f32 %v2804_v9, %v2679_v18 }
 0x663   : > { %v2675_v15 = vpop.f32.mrf.mxu1 }
 0x664   : > { %v2680_v20 = vadd.f32 %v2675_v15, %v2568_v19 }
 0x665   : > { %v5136_v16 = vpop.f32.mrf.mxu1 }
 0x666   : > { %v2812_v27 = vadd.f32 %v2807_v11, %v2680_v20 }
 0x67f   : > { %v2920_v22 = vpop.f32.mrf.mxu1 }
 0x680   : > { %v2927_v24 = vadd.f32 %v2920_v22, %v2811_v21 }
 0x681   : > { %v5175_v25 = vpop.f32.mrf.mxu1 }
 0x682   : > { %v2937_v26 = vadd.f32 %v4375_v23, %v2927_v24 }
 0x683   : > { %v2923_v28 = vpop.f32.mrf.mxu1 }
 0x684   : > { %v6460_v29 = vmax.f32 %v2937_v26, 0.0  ;;  %v2928_v30 = vadd.f32 %v2923_v28, %v2812_v27  ;;  %v5513_v26 = vld [vmem:[%s6714_s1 + $0x5f8] sm:$0xff]  }
 0x685   : > { %v5176_v31 = vpop.f32.mrf.mxu1 }
 0x686   : > { %v2938_v32 = vadd.f32 %v4375_v23, %v2928_v30  ;;  %2941 = vadd.xlane.f32.xlu0 %v6460_v29  ;;  %v2947_v34 = vmul.f32 %v6460_v29, %v6460_v29 }
 0x688   : > { %v6463_v33 = vmax.f32 %v2938_v32, 0.0 }
 0x68a   : > { %2949 = vadd.xlane.f32.xlu0 %v2947_v34  ;;  %2943 = vadd.xlane.f32.xlu1 %v6463_v33  ;;  %v2948_v35 = vmul.f32 %v6463_v33, %v6463_v33 }
 0x68e   : > { %2951 = vadd.xlane.f32.xlu1 %v2948_v35  ;;  %v5516_v35 = vld [vmem:[%s6714_s1 + $0x5f0] sm:$0xff]  }
 0x70f   : > { %v2942_v52 = vpop.xlane.xlu0 %2941 }
 0x710   : > { %v2945_v53 = vmul.f32 0.03125, %v2942_v52  ;;  %v5526_v52 = vld [vmem:[%s6714_s1 + $0x5c8] sm:$0xff]  }
 0x712   : > { %v2955_v56 = vmul.f32 %v2945_v53, %v2945_v53  ;;  %v2959_v3 = vsub.f32 %v6460_v29, %v2945_v53  ;;  %v5530_v53 = vld [vmem:[#allocation2 + $0xc] ss:$0 sps:$4 sm:$0x11]  }
 0x713   : > { %v2950_v54 = vpop.xlane.xlu0 %2949  ;;  %v2944_v55 = vpop.xlane.xlu1 %2943 }
 0x714   : > { %v2953_v57 = vmul.f32 0.03125, %v2950_v54  ;;  %v2946_v58 = vmul.f32 0.03125, %v2944_v55  ;;  %v5525_v54 = vld [vmem:[%s6714_s1 + $0x590] sm:$0xff]  }
 0x716   : > { %v2957_v59 = vsub.f32 %v2953_v57, %v2955_v56  ;;  %v2956_v62 = vmul.f32 %v2946_v58, %v2946_v58  ;;  %v2960_v9 = vsub.f32 %v6463_v33, %v2946_v58  ;;  %v3392_v56 = vshll.u32 %v5530_v53, 16  ;;  %v5528_v57 = vld [vmem:[%s6714_s1 + $0x5c0] sm:$0xff]  }
 0x717   : > { %v2952_v60 = vpop.xlane.xlu1 %2951 }
 0x718   : > { %v2961_v61 = vadd.f32 1e-05, %v2957_v59  ;;  %v2954_v63 = vmul.f32 0.03125, %v2952_v60  ;;  %v5527_v59 = vld [vmem:[%s6714_s1 + $0x588] sm:$0xff]  }
 0x71a   : > { %5563 = vrsqrt.f32 %v2961_v61  ;;  %v2958_v0 = vsub.f32 %v2954_v63, %v2956_v62  ;;  %v3394_v61 = vrot.slane %v3392_v56, 1  ;;  %v5531_v63 = vld [vmem:[%s6714_s1 + $0x580] sm:$0xff]   ;;  %v5548_v56 = vld [vmem:[%s6718_s5 + $0x8] sm:$0xff]  }
 0x71c   : > { %v2962_v2 = vadd.f32 1e-05, %v2958_v0  ;;  %v5533_v0 = vld [vmem:[%s6714_s1 + $0x638] sm:$0xff]  }
 0x71e   : > { %5565 = vrsqrt.f32 %v2962_v2 }
 0x727   : > { %v5564_v4 = vpop.eup %5563 }
 0x728   : > { %v2965_v6 = vmul.f32 %v5564_v4, %v2959_v3  ;;  %v5534_v3 = vld [vmem:[%s6714_s1 + $0x630] sm:$0xff]   ;;  %v5535_v4 = vld [vmem:[%s6714_s1 + $0x628] sm:$0xff]  }
 0x72a   : > { %v2975_v8 = vmul.f32 %v4377_v5, %v2965_v6  ;;  %v5537_v6 = vld [vmem:[%s6714_s1 + $0x618] sm:$0xff]  }
 0x72b   : > { %v5566_v10 = vpop.eup %5565 }
 0x72c   : > { %v2985_v11 = vadd.f32 %v4379_v7, %v2975_v8  ;;  %v2966_v12 = vmul.f32 %v5566_v10, %v2960_v9  ;;  %v5539_v8 = vld [vmem:[%s6714_s1 + $0x608] sm:$0xff]  }
 0x72e   : > { %v4539_v13 = vpack.c.bf16 %v2985_v11, %v2985_v11  ;;  %v2976_v14 = vmul.f32 %v4377_v5, %v2966_v12  ;;  %v5536_v5 = vld [vmem:[%s6714_s1 + $0x620] sm:$0xff]  }
 0x72f   : > { %v5540_v11 = vld [vmem:[%s6714_s1 + $0x600] sm:$0xff]  }
 0x730   : > { %2995 = vst [vmem:[#allocation2 + $0x4] sm:$0xf] %v4539_v13  ;;  %v2986_v15 = vadd.f32 %v4379_v7, %v2976_v14  ;;  %v5538_v7 = vld [vmem:[%s6714_s1 + $0x610] sm:$0xff]   ;;  %v3510_v13 = vrot.slane %v5530_v53, 1  ;;  %v5545_v53 = vld [vmem:[%s6718_s5 + $0x20] sm:$0xff]  }
 0x732   : > { %v4540_v16 = vpack.c.bf16 %v2986_v15, %v2986_v15 }
 0x734   : > { %2996 = vst [vmem:[#allocation2 + $0x8] sm:$0xf] %v4540_v16 }
 0x737   : > { %v6542_v18 = vld [vmem:[#allocation2 + $0x4] sm:$0xf] }
 0x738   : > { %v4414_v19 = vcombine.low %v2997_v17, %v6542_v18  ;;  %v3356_v46 = vld [vmem:[#allocation2 + $0x4] sm:$0xf] }
 0x739   : > { %v3488_v9 = vld [vmem:[#allocation2 + $0x4] sm:$0xe] }
 0x73a   : > { %v3044_v20 = vshrl.u32 %v4414_v19, 16  ;;  %v3047_v22 = vshll.u32 %v4414_v19, 16  ;;  %v3153_v24 = vrot.slane %v4414_v19, 3 }
 0x73b   : > { %v5512_v21 = vld [vmem:[#allocation2 + $0x8] ss:$0 sps:$4 sm:$0x77]  }
 0x73c   : > { %v6545_v23 = vld [vmem:[#allocation2 + $0x8] sm:$0xf]  ;;  %v3154_v25 = vrot.slane %v5512_v21, 3  ;;  %v3046_v28 = vrot.slane %v3044_v20, 3  ;;  %v3049_v30 = vrot.slane %v3047_v22, 4 }
 0x73d   : > { %v4415_v27 = vcombine.low %v6545_v23, %v6545_v23  ;;  %v6581_v44 = vld [vmem:[#allocation2 + $0x8] sm:$0xf]  ;;  %v4449_v2 = vcombine.low %v6542_v18, %v6545_v23 }
 0x73e   : > { %v3155_v29 = vsel %vm453_vm2, %v3153_v24, %v3154_v25  ;;  %v3050_v36 = vor.u32 %v3049_v30, %v3046_v28  ;;  %v4474_v48 = vcombine.low %v3356_v46, %v6581_v44  ;;  %v4500_v10 = vcombine.low %v3488_v9, %v6581_v44 }
 0x73f   : > { %v3052_v31 = vshrl.u32 %v4415_v27, 16  ;;  %v3055_v32 = vshll.u32 %v4415_v27, 16  ;;  %5214 = vmatmul.mubr.bf16.vlgmr.msra.gmra.mxu1 %v3155_v29 }
 0x740   : > { %5238 = vmatpush3.bf16.msra.mxu1 %v5513_v26  ;;  %5253 = vmatprep.mubr.msk.bf16.mxu1 %vm5580_vm0, %v5579_v1  ;;  %v3387_v51 = vshll.u32 %v4474_v48, 16  ;;  %v3385_v58 = vshrl.u32 %v4474_v48, 16  ;;  %v3509_v12 = vrot.slane %v4500_v10, 1 }
 0x741   : > { %v3054_v33 = vrot.slane %v3052_v31, 3  ;;  %v3057_v34 = vrot.slane %v3055_v32, 4  ;;  %5239 = vmatprep.subr.bf16.mxu1 %v5579_v1 }
 0x742   : > { %v3389_v55 = vrot.slane %v3387_v51, 1  ;;  %v3511_v14 = vsel %vm811_vm5, %v3509_v12, %v3510_v13  ;;  %v5543_v51 = vld [vmem:[%s6718_s5 + $0x30] sm:$0xff]   ;;  %v4514_v12 = vld [vmem:[%s6717_s4 + $0x4] ss:$0 sm:$0xff] }
 0x743   : > { %v3058_v37 = vor.u32 %v3057_v34, %v3054_v33 }
 0x744   : > { %5240 = vmatpush3.bf16.msra.mxu1 %v5516_v35  ;;  %v3390_v60 = vor.u32 %v3389_v55, %v3385_v58  ;;  %v5547_v55 = vld [vmem:[%s6718_s5 + $0x10] sm:$0xff]  }
 0x745   : > { %v3059_v39 = vsel %vm342_vm3, %v3050_v36, %v3058_v37  ;;  %5241 = vmatprep.subr.bf16.mxu1 %v5579_v1  ;;  %v4510_v37 = vld [vmem:[%s6715_s2 + $0x4] ss:$0 sm:$0xff] }
 0x746   : > { %5194 = vmatmul.mubr.bf16.vlgmr.msra.gmra.mxu0 %v3059_v39  ;;  %v3395_v62 = vsel %vm685_vm4, %v3390_v60, %v3394_v61 }
 0x747   : > { %5218 = vmatpush3.bf16.msra.mxu0 %v5515_v38  ;;  %5233 = vmatprep.mubr.msk.bf16.mxu0 %vm5580_vm0, %v5579_v1 }
 0x748   : > { %5219 = vmatprep.subr.bf16.mxu0 %v5579_v1  ;;  %5242 = vmatpush3.bf16.msra.mxu1 %v5518_v40 }
 0x749   : > { %5243 = vmatprep.subr.bf16.mxu1 %v5579_v1 }
 0x74b   : > { %5220 = vmatpush3.bf16.msra.mxu0 %v5517_v41 }
 0x74c   : > { %5221 = vmatprep.subr.bf16.mxu0 %v5579_v1  ;;  %5244 = vmatpush3.bf16.msra.mxu1 %v5520_v42 }
 0x74d   : > { %5245 = vmatprep.subr.bf16.mxu1 %v5579_v1 }
 0x74f   : > { %5222 = vmatpush3.bf16.msra.mxu0 %v5519_v43 }
 0x750   : > { %5223 = vmatprep.subr.bf16.mxu0 %v5579_v1  ;;  %5246 = vmatpush3.bf16.msra.mxu1 %v5522_v45 }
 0x751   : > { %5247 = vmatprep.subr.bf16.mxu1 %v5579_v1 }
 0x753   : > { %5224 = vmatpush3.bf16.msra.mxu0 %v5521_v47 }
 0x754   : > { %5225 = vmatprep.subr.bf16.mxu0 %v5579_v1  ;;  %5248 = vmatpush3.bf16.msra.mxu1 %v5524_v49 }
 0x755   : > { %5249 = vmatprep.subr.bf16.mxu1 %v5579_v1 }
 0x757   : > { %5226 = vmatpush3.bf16.msra.mxu0 %v5523_v50  ;;  %v5542_v50 = vld [vmem:[%s6718_s5 + $0x38] sm:$0xff]  }
 0x758   : > { %5227 = vmatprep.subr.bf16.mxu0 %v5579_v1  ;;  %5250 = vmatpush3.bf16.msra.mxu1 %v5526_v52  ;;  %v5544_v52 = vld [vmem:[%s6718_s5 + $0x28] sm:$0xff]  }
 0x759   : > { %5251 = vmatprep.subr.bf16.mxu1 %v5579_v1 }
 0x75b   : > { %5228 = vmatpush3.bf16.msra.mxu0 %v5525_v54  ;;  %v5546_v54 = vld [vmem:[%s6718_s5 + $0x18] sm:$0xff]  }
 0x75c   : > { %5229 = vmatprep.subr.bf16.mxu0 %v5579_v1  ;;  %5252 = vmatpush3.bf16.msra.mxu1 %v5528_v57  ;;  %v5549_v57 = vld [vmem:[%s6718_s5] sm:$0xff]  }
 0x75d   : > { %5277 = vmatprep.subr.bf16.mxu1 %v5579_v1 }
 0x75f   : > { %5230 = vmatpush3.bf16.msra.mxu0 %v5527_v59  ;;  %5254 = vmatmul.mubr.bf16.vlgmr.msra.gmra.mxu1 %v3395_v62 }
 0x760   : > { %5231 = vmatprep.subr.bf16.mxu0 %v5579_v1  ;;  %5293 = vmatprep.mubr.msk.bf16.mxu1 %vm5580_vm0, %v5579_v1 }
 0x761   : > { %5278 = vmatpush3.bf16.msra.mxu1 %v5542_v50 }
 0x762   : > { %5279 = vmatprep.subr.bf16.mxu1 %v5579_v1 }
 0x763   : > { %5232 = vmatpush3.bf16.msra.mxu0 %v5531_v63 }
 0x764   : > { %5257 = vmatprep.subr.bf16.mxu0 %v5579_v1 }
 0x765   : > { %5280 = vmatpush3.bf16.msra.mxu1 %v5543_v51 }
 0x766   : > { %5234 = vmatmul.mubr.bf16.vlgmr.msra.gmra.mxu0 %v4449_v2  ;;  %5281 = vmatprep.subr.bf16.mxu1 %v5579_v1 }
 0x767   : > { %5258 = vmatpush3.bf16.msra.mxu0 %v5533_v0  ;;  %5273 = vmatprep.mubr.msk.bf16.mxu0 %vm5580_vm0, %v5579_v1 }
 0x768   : > { %5259 = vmatprep.subr.bf16.mxu0 %v5579_v1 }
 0x769   : > { %5282 = vmatpush3.bf16.msra.mxu1 %v5544_v52 }
 0x76a   : > { %5283 = vmatprep.subr.bf16.mxu1 %v5579_v1 }
 0x76b   : > { %5260 = vmatpush3.bf16.msra.mxu0 %v5534_v3 }
 0x76c   : > { %5261 = vmatprep.subr.bf16.mxu0 %v5579_v1 }
 0x76d   : > { %5284 = vmatpush3.bf16.msra.mxu1 %v5545_v53 }
 0x76e   : > { %5285 = vmatprep.subr.bf16.mxu1 %v5579_v1 }
 0x76f   : > { %5262 = vmatpush3.bf16.msra.mxu0 %v5535_v4 }
 0x770   : > { %5263 = vmatprep.subr.bf16.mxu0 %v5579_v1 }
 0x771   : > { %5286 = vmatpush3.bf16.msra.mxu1 %v5546_v54 }
 0x772   : > { %5287 = vmatprep.subr.bf16.mxu1 %v5579_v1 }
 0x773   : > { %5264 = vmatpush3.bf16.msra.mxu0 %v5536_v5 }
 0x774   : > { %5265 = vmatprep.subr.bf16.mxu0 %v5579_v1 }
 0x775   : > { %5288 = vmatpush3.bf16.msra.mxu1 %v5547_v55 }
 0x776   : > { %5289 = vmatprep.subr.bf16.mxu1 %v5579_v1 }
 0x777   : > { %5266 = vmatpush3.bf16.msra.mxu0 %v5537_v6 }
 0x778   : > { %5267 = vmatprep.subr.bf16.mxu0 %v5579_v1 }
 0x779   : > { %5290 = vmatpush3.bf16.msra.mxu1 %v5548_v56 }
 0x77a   : > { %5291 = vmatprep.subr.bf16.mxu1 %v5579_v1 }
 0x77b   : > { %5268 = vmatpush3.bf16.msra.mxu0 %v5538_v7 }
 0x77c   : > { %5269 = vmatprep.subr.bf16.mxu0 %v5579_v1 }
 0x77d   : > { %5292 = vmatpush3.bf16.msra.mxu1 %v5549_v57 }
 0x77f   : > { %5270 = vmatpush3.bf16.msra.mxu0 %v5539_v8 }
 0x780   : > { %5271 = vmatprep.subr.bf16.mxu0 %v5579_v1  ;;  %v4512_v1 = vld [vmem:[%s6716_s3 + $0x4] ss:$0 sm:$0xff] }
 0x783   : > { %5272 = vmatpush3.bf16.msra.mxu0 %v5540_v11 }
 0x786   : > { %5274 = vmatmul.mubr.bf16.vlgmr.msra.gmra.mxu0 %v3511_v14 }
 0x7ff   : > { %v3239_v15 = vpop.f32.mrf.mxu1 }
 0x801   : > { %v5215_v16 = vpop.f32.mrf.mxu1 }
 0x803   : > { %v3242_v17 = vpop.f32.mrf.mxu1 }
 0x805   : > { %v5216_v19 = vpop.f32.mrf.mxu1 }
 0x806   : > { %v3143_v18 = vpop.f32.mrf.mxu0 }
 0x807   : > { %v3240_v31 = vadd.f32 %v3239_v15, %v3143_v18 }
 0x808   : > { %v5195_v20 = vpop.f32.mrf.mxu0 }
 0x80a   : > { %v3146_v21 = vpop.f32.mrf.mxu0 }
 0x80b   : > { %v3243_v33 = vadd.f32 %v3242_v17, %v3146_v21 }
 0x80c   : > { %v5196_v22 = vpop.f32.mrf.mxu0 }
 0x81f   : > { %v3479_v23 = vpop.f32.mrf.mxu1 }
 0x821   : > { %v5255_v24 = vpop.f32.mrf.mxu1 }
 0x823   : > { %v3482_v25 = vpop.f32.mrf.mxu1 }
 0x825   : > { %v5256_v27 = vpop.f32.mrf.mxu1 }
 0x826   : > { %v3347_v26 = vpop.f32.mrf.mxu0 }
 0x827   : > { %v3354_v32 = vadd.f32 %v3347_v26, %v3240_v31 }
 0x828   : > { %v5235_v28 = vpop.f32.mrf.mxu0 }
 0x829   : > { %v3486_v35 = vadd.f32 %v3479_v23, %v3354_v32  ;;  %v4517_v23 = vld [vmem:[%s6719_s6] ss:$0 sm:$0xff] }
 0x82a   : > { %v3350_v29 = vpop.f32.mrf.mxu0 }
 0x82b   : > { %v3355_v34 = vadd.f32 %v3350_v29, %v3243_v33 }
 0x82c   : > { %v5236_v30 = vpop.f32.mrf.mxu0 }
 0x82d   : > { %v3487_v41 = vadd.f32 %v3482_v25, %v3355_v34 }
 0x846   : > { %v3595_v36 = vpop.f32.mrf.mxu0 }
 0x847   : > { %v3602_v38 = vadd.f32 %v3595_v36, %v3486_v35 }
 0x848   : > { %v5275_v39 = vpop.f32.mrf.mxu0 }
 0x849   : > { %v3612_v40 = vadd.f32 %v4510_v37, %v3602_v38 }
 0x84a   : > { %v3598_v42 = vpop.f32.mrf.mxu0 }
 0x84b   : > { %v3614_v43 = vmax.f32 %v3612_v40, 0.0  ;;  %v3603_v44 = vadd.f32 %v3598_v42, %v3487_v41 }
 0x84c   : > { %v5276_v45 = vpop.f32.mrf.mxu0 }
 0x84d   : > { %v3613_v46 = vadd.f32 %v4510_v37, %v3603_v44  ;;  %3616 = vadd.xlane.f32.xlu0 %v3614_v43  ;;  %v3622_v48 = vmul.f32 %v3614_v43, %v3614_v43 }
 0x84f   : > { %v3615_v47 = vmax.f32 %v3613_v46, 0.0 }
 0x851   : > { %3624 = vadd.xlane.f32.xlu0 %v3622_v48  ;;  %3618 = vadd.xlane.f32.xlu1 %v3615_v47  ;;  %v3623_v49 = vmul.f32 %v3615_v47, %v3615_v47 }
 0x855   : > { %3626 = vadd.xlane.f32.xlu1 %v3623_v49 }
 0x8d6   : > { %v3617_v58 = vpop.xlane.xlu0 %3616 }
 0x8d7   : > { %v3620_v59 = vmul.f32 0.03125, %v3617_v58 }
 0x8d9   : > { %v3630_v62 = vmul.f32 %v3620_v59, %v3620_v59  ;;  %v3634_v9 = vsub.f32 %v3614_v43, %v3620_v59 }
 0x8da   : > { %v3625_v60 = vpop.xlane.xlu0 %3624  ;;  %v3619_v61 = vpop.xlane.xlu1 %3618 }
 0x8db   : > { %v3628_v63 = vmul.f32 0.03125, %v3625_v60  ;;  %v3621_v0 = vmul.f32 0.03125, %v3619_v61 }
 0x8dd   : > { %v3632_v2 = vsub.f32 %v3628_v63, %v3630_v62  ;;  %v3631_v5 = vmul.f32 %v3621_v0, %v3621_v0  ;;  %v3635_v14 = vsub.f32 %v3615_v47, %v3621_v0 }
 0x8de   : > { %v3627_v3 = vpop.xlane.xlu1 %3626 }
 0x8df   : > { %v3636_v4 = vadd.f32 1e-05, %v3632_v2  ;;  %v3629_v6 = vmul.f32 0.03125, %v3627_v3 }
 0x8e1   : > { %5567 = vrsqrt.f32 %v3636_v4  ;;  %v3633_v7 = vsub.f32 %v3629_v6, %v3631_v5 }
 0x8e3   : > { %v3637_v8 = vadd.f32 1e-05, %v3633_v7 }
 0x8e5   : > { %5569 = vrsqrt.f32 %v3637_v8 }
 0x8ee   : > { %v5568_v10 = vpop.eup %5567 }
 0x8ef   : > { %v3640_v11 = vmul.f32 %v5568_v10, %v3634_v9 }
 0x8f1   : > { %v3650_v13 = vmul.f32 %v4512_v1, %v3640_v11 }
 0x8f2   : > { %v5570_v15 = vpop.eup %5569 }
 0x8f3   : > { %v3660_v16 = vadd.f32 %v4514_v12, %v3650_v13  ;;  %v3641_v17 = vmul.f32 %v5570_v15, %v3635_v14 }
 0x8f5   : > { %v4541_v18 = vpack.c.bf16 %v3660_v16, %v3660_v16  ;;  %v3651_v19 = vmul.f32 %v4512_v1, %v3641_v17 }
 0x8f7   : > { %3670 = vst [vmem:[#allocation2 + $0x4] sm:$0xf] %v4541_v18  ;;  %v3661_v20 = vadd.f32 %v4514_v12, %v3651_v19 }
 0x8f9   : > { %v4542_v21 = vpack.c.bf16 %v3661_v20, %v3661_v20 }
 0x8fb   : > { %3671 = vst [vmem:[#allocation2 + $0x8] sm:$0xf] %v4542_v21 }
 0x902   : > { %v5550_v22 = vld [vmem:[#allocation2 + $0x4] sm:$0xff]  }
 0x903   : > { %5294 = vmatmul.mubr.bf16.vlgmr.msra.gmra.mxu1 %v5550_v22 }
 0x9c3   : > { %v3785_v24 = vpop.f32.mrf.mxu1 }
 0x9c4   : > { %v3786_v25 = vadd.f32 %v4517_v23, %v3785_v24 }
 0x9c5   : > { %v5295_v26 = vpop.f32.mrf.mxu1 }
 0x9c6   : > { %3793 = vst.msk [vmem:[%s278_s16] sm:$0xff] %vm3792_vm6, %v3786_v25 }
 0x9c7   : > { %v3788_v27 = vpop.f32.mrf.mxu1 }
 0x9c8   : > { %v3789_v28 = vadd.f32 %v4517_v23, %v3788_v27 }
 0x9c9   : > { %v5296_v29 = vpop.f32.mrf.mxu1 }
 0x9ca   : > { %3794 = vst.msk [vmem:[%s278_s16 + $0x8] sm:$0xff] %vm3792_vm6, %v3789_v28 }
 0x9cb PF: > { %s17_s24 = sadd.s32 1, %s5577_s24  }
 0x9cc   : > { %p14_p4 = scmp.ge.s32.totalorder %s17_s24, 4  }
 0x9ce   :  { %16 = sbr.rel (!%p14_p4) target bundleno = 1 (0x1), region = 114 }

</bundles_post_ra>
